<compile_context>
chip_gen: v5e
topology: v5e:2x2
jax: 0.10.0
libtpu: 0.0.40
codegen_flags: <defaults>
</compile_context>

<pallas_src>
import functools

import jax
import jax.numpy as jnp
from jax.experimental import pallas as pl
from jax.experimental.pallas import tpu as pltpu


N_FEATURES = 24
# (in, out) per linear layer, in forward order.
LAYER_DIMS = [
    (N_FEATURES, 200),  # en1
    (200, 100),         # en2
    (100, 50),          # en3
    (50, 15),           # en4
    (15, 50),           # de1
    (50, 100),          # de2
    (100, 200),         # de3
    (200, N_FEATURES),  # de4
]
NUM_LAYERS = len(LAYER_DIMS)
LEAKY_SLOPE = 0.01  # nn.LeakyReLU default negative_slope


def _pad_to(n, m):
    return ((n + m - 1) // m) * m


def _cdiv(a, b):
    return -(-a // b)


# Padded (in, out) dims per layer. out_p[i] == in_p[i+1], so the activation
# tensor chains through the layers with no reslicing.
PADDED_LAYER_DIMS = [(_pad_to(di, 128), _pad_to(do, 128)) for di, do in LAYER_DIMS]
IN_P = PADDED_LAYER_DIMS[0][0]                         # 128
MAX_OUT_P = max(do for _, do in PADDED_LAYER_DIMS)     # 256
W_ROWS = sum(di for di, _ in PADDED_LAYER_DIMS)        # 1280

W_ROW_OFFSETS = []
_off = 0
for _di, _ in PADDED_LAYER_DIMS:
    W_ROW_OFFSETS.append(_off)
    _off += _di


def _activation_dtype():
    """bf16 inter-layer activations only where the VPU has native bf16."""
    try:
        kind = jax.devices()[0].device_kind.lower()
    except Exception:  # pragma: no cover
        return jnp.float32
    return jnp.bfloat16 if ("v6" in kind or "v7" in kind) else jnp.float32


def _choose_batch_tiling(batch):
    """Pick (tile_b, b_pad): big tiles to amortize per-step overhead, but
    >= 2 grid steps when batch >= 256 so the v7x megacore split applies."""
    b128 = _pad_to(max(batch, 1), 128)
    if b128 <= 128:
        return 128, 128
    steps = max(2, _cdiv(b128, 1024))          # tiles of at most 1024 rows
    tile_b = _pad_to(_cdiv(b128, steps), 128)
    b_pad = tile_b * _cdiv(batch, tile_b)
    return tile_b, b_pad


def ae24d_kernel(x_ref, w_ref, b_ref, out_ref, xpad_ref, *, act_dtype):
    """Fused forward pass of AE_24D over one (tile_b, 24) activation tile.

    x_ref    : (tile_b, 24)   bf16 -- raw input rows for this grid step
    w_ref    : (1280, 256)    bf16 -- all 8 padded weight matrices, row-stacked
    b_ref    : (8, 256)       f32  -- all 8 padded bias rows
    out_ref  : (tile_b, 24)   f32
    xpad_ref : (tile_b, 128)  bf16 -- VMEM scratch for in-kernel lane padding
    """
    # Lane-pad 24 -> 128 inside VMEM (exact zeros in the padded lanes).
    xpad_ref[...] = jnp.zeros_like(xpad_ref)
    xpad_ref[:, :N_FEATURES] = x_ref[...]
    h = xpad_ref[...]                                   # (tile_b, 128) bf16

    # LeakyReLU follows every layer except the last: encode uses it after
    # en1..en3, decode applies it to the latent z and after de1..de3, and de4
    # (layer 7) has no activation.
    for layer, (din_p, dout_p) in enumerate(PADDED_LAYER_DIMS):
        row = W_ROW_OFFSETS[layer]
        w = w_ref[row:row + din_p, :dout_p]             # bf16, static slice
        acc = jnp.dot(h.astype(jnp.bfloat16), w,
                      preferred_element_type=jnp.float32)
        acc = acc + b_ref[layer:layer + 1, :dout_p]     # f32 bias add
        if layer < NUM_LAYERS - 1:
            acc = acc.astype(act_dtype)
            h = jnp.maximum(acc, LEAKY_SLOPE * acc)     # LeakyReLU
        else:
            h = acc                                     # f32, no activation

    out_ref[...] = h[:, :N_FEATURES].astype(out_ref.dtype)


def prepare_params(params):
    """One-time preprocessing: pad, transpose to (in, out), cast weights to
    bf16 and concatenate into a single slab. `params` is a list of (W, b)
    with W of shape (out, in) (PyTorch nn.Linear convention)."""
    w_slab = jnp.zeros((W_ROWS, MAX_OUT_P), jnp.bfloat16)
    b_slab = jnp.zeros((NUM_LAYERS, MAX_OUT_P), jnp.float32)
    for layer, ((din, dout), (w, b)) in enumerate(zip(LAYER_DIMS, params)):
        row = W_ROW_OFFSETS[layer]
        w_slab = w_slab.at[row:row + din, :dout].set(w.T.astype(jnp.bfloat16))
        b_slab = b_slab.at[layer, :dout].set(b.astype(jnp.float32))
    return w_slab, b_slab


@jax.jit
def ae24d_forward(x, w_slab, b_slab):
    """x: (B, 24) float32. w_slab/b_slab from prepare_params. Returns (B, 24)."""
    batch, nfeat = x.shape
    assert nfeat == N_FEATURES

    tile_b, b_pad = _choose_batch_tiling(batch)
    grid = (b_pad // tile_b,)

    # Only batch-pad + bf16 cast on the host (24 lanes -> tiny HBM traffic);
    # the 24 -> 128 lane padding happens inside the kernel.
    if b_pad == batch:
        x_p = x.astype(jnp.bfloat16)
    else:
        x_p = jnp.zeros((b_pad, N_FEATURES), jnp.bfloat16)
        x_p = x_p.at[:batch, :].set(x.astype(jnp.bfloat16))

    act_dtype = _activation_dtype()
    kernel = functools.partial(ae24d_kernel, act_dtype=act_dtype)

    flops = 2 * b_pad * sum(di * do for di, do in PADDED_LAYER_DIMS)
    bytes_accessed = (w_slab.size * 2            # bf16 weights
                      + b_slab.size * 4          # f32 biases
                      + x_p.size * 2             # bf16 input (24 lanes)
                      + b_pad * N_FEATURES * 4)  # f32 output (24 lanes)

    out_p = pl.pallas_call(
        kernel,
        out_shape=jax.ShapeDtypeStruct((b_pad, N_FEATURES), jnp.float32),
        grid_spec=pltpu.PrefetchScalarGridSpec(
            num_scalar_prefetch=0,
            grid=grid,
            in_specs=[
                # Activation tile: pipelined over the batch grid; last block
                # dim (24) equals the full array dim, so the layout rule holds.
                pl.BlockSpec((tile_b, N_FEATURES), lambda i: (i, 0)),
                # Weight / bias slabs: same block every step -> VMEM-resident.
                pl.BlockSpec((W_ROWS, MAX_OUT_P), lambda i: (0, 0)),
                pl.BlockSpec((NUM_LAYERS, MAX_OUT_P), lambda i: (0, 0)),
            ],
            out_specs=pl.BlockSpec((tile_b, N_FEATURES), lambda i: (i, 0)),
            scratch_shapes=[pltpu.VMEM((tile_b, IN_P), jnp.bfloat16)],
        ),
        compiler_params=pltpu.CompilerParams(
            dimension_semantics=("parallel",)),   # megacore batch split on v7x
        cost_estimate=pl.CostEstimate(
            flops=flops, transcendentals=0, bytes_accessed=bytes_accessed),
    )(x_p, w_slab, b_slab)

    return out_p[:batch, :]


def init_params(key):
    """Deterministic init matching nn.Linear shapes: W (out, in), b (out,).
    Uses uniform(-1/sqrt(in), 1/sqrt(in)) like PyTorch's default."""
    params = []
    for (din, dout) in LAYER_DIMS:
        key, kw, kb = jax.random.split(key, 3)
        bound = 1.0 / jnp.sqrt(jnp.float32(din))
        w = jax.random.uniform(kw, (dout, din), jnp.float32, -bound, bound)
        b = jax.random.uniform(kb, (dout,), jnp.float32, -bound, bound)
        params.append((w, b))
    return params


def reference_forward(x, params):
    """Pure-JAX f32 reference mirroring the PyTorch module exactly."""
    h = x.astype(jnp.float32)
    # encode: leaky after en1..en3
    for layer in range(4):
        w, b = params[layer]
        h = h @ w.T + b
        if layer < 3:
            h = jnp.where(h > 0, h, LEAKY_SLOPE * h)
    # decode: leaky on the latent, then after de1..de3; none after de4
    h = jnp.where(h > 0, h, LEAKY_SLOPE * h)
    for layer in range(4, 8):
        w, b = params[layer]
        h = h @ w.T + b
        if layer < 7:
            h = jnp.where(h > 0, h, LEAKY_SLOPE * h)
    return h


if __name__ == "__main__":
    key = jax.random.PRNGKey(0)
    params = init_params(key)

    # One-time weight preprocessing (pad + transpose + bf16 + concat).
    w_slab, b_slab = prepare_params(params)

    # Two batch sizes: 256 (two 128-row steps) and 1000 (two 512-row steps
    # with row padding) exercise pipelining, adaptive tiling and the masked
    # 24-lane output path.
    for batch in (256, 1000):
        key, kx = jax.random.split(key)
        x = jax.random.normal(kx, (batch, N_FEATURES), jnp.float32)

        out = ae24d_forward(x, w_slab, b_slab)
        out = jax.block_until_ready(out)

        ref = reference_forward(x, params)
        assert out.shape == (batch, N_FEATURES)
        max_err = jnp.max(jnp.abs(out - ref))
        # bf16 weights/matmul inputs => loosened tolerance vs the f32 reference.
        assert jnp.allclose(out, ref, atol=1e-2, rtol=1e-2), (
            f"batch={batch}: max abs err = {max_err}")

    print("KERNEL_OK")
</pallas_src>

<mosaic_0001>
module attributes {stable_mosaic.version = 11 : i64} {
  func.func @ae24d_kernel(%arg0: i32, %arg1: memref<128x24xbf16, #tpu.memory_space<vmem>>, %arg2: memref<1280x256xbf16, #tpu.memory_space<vmem>>, %arg3: memref<8x256xf32, #tpu.memory_space<vmem>>, %arg4: memref<128x24xf32, #tpu.memory_space<vmem>>, %arg5: memref<128x128xbf16, #tpu.memory_space<vmem>>) attributes {dimension_semantics = [#tpu.dimension_semantics<parallel>], iteration_bounds = array<i64: 2>, scalar_prefetch = 0 : i64, scratch_operands = 1 : i64, tpu.core_type = #tpu.core_type<tc>, window_params = [{transform_indices = @transform_0, window_bounds = array<i64: 128, 24>}, {pipeline_mode = #tpu.pipeline_mode<synchronous>, transform_indices = @transform_1, window_bounds = array<i64: 1280, 256>}, {pipeline_mode = #tpu.pipeline_mode<synchronous>, transform_indices = @transform_2, window_bounds = array<i64: 8, 256>}, {transform_indices = @transform_3, window_bounds = array<i64: 128, 24>}]} {
    %cst = arith.constant 0.000000e+00 : bf16
    %0 = vector.broadcast %cst : bf16 to vector<128x128xbf16>
    %c0 = arith.constant 0 : index
    %c0_0 = arith.constant 0 : index
    %1 = vector.load %arg5[%c0, %c0_0] : memref<128x128xbf16, #tpu.memory_space<vmem>>, vector<128x128xbf16>
    tpu.vector_store %arg5[%c0, %c0_0], %0 {strides = array<i32>} : memref<128x128xbf16, #tpu.memory_space<vmem>>, vector<128x128xbf16>,
    %c0_1 = arith.constant 0 : index
    %c0_2 = arith.constant 0 : index
    %2 = vector.load %arg1[%c0_1, %c0_2] : memref<128x24xbf16, #tpu.memory_space<vmem>>, vector<128x24xbf16>
    %c0_3 = arith.constant 0 : index
    %c0_4 = arith.constant 0 : index
    %3 = vector.load %arg5[%c0_3, %c0_4] : memref<128x128xbf16, #tpu.memory_space<vmem>>, vector<128x24xbf16>
    tpu.vector_store %arg5[%c0_3, %c0_4], %2 {strides = array<i32>} : memref<128x128xbf16, #tpu.memory_space<vmem>>, vector<128x24xbf16>,
    %c0_5 = arith.constant 0 : index
    %c0_6 = arith.constant 0 : index
    %4 = vector.load %arg5[%c0_5, %c0_6] : memref<128x128xbf16, #tpu.memory_space<vmem>>, vector<128x128xbf16>
    %c0_7 = arith.constant 0 : index
    %c0_8 = arith.constant 0 : index
    %5 = vector.load %arg2[%c0_7, %c0_8] : memref<1280x256xbf16, #tpu.memory_space<vmem>>, vector<128x256xbf16>
    %cst_9 = arith.constant dense<0.000000e+00> : vector<128x256xf32>
    %6 = tpu.matmul %4, %5, %cst_9 {dimension_numbers = #tpu.dot_dimension_numbers<[1], [0], [0], [1], [0, 0, 1, 1], [], []>} : vector<128x128xbf16>, vector<128x256xbf16>, vector<128x256xf32> -> vector<128x256xf32>
    %c0_10 = arith.constant 0 : index
    %c0_11 = arith.constant 0 : index
    %7 = vector.load %arg3[%c0_10, %c0_11] : memref<8x256xf32, #tpu.memory_space<vmem>>, vector<1x256xf32>
    %8 = vector.broadcast %7 : vector<1x256xf32> to vector<128x256xf32>
    %9 = arith.addf %6, %8 : vector<128x256xf32>
    %cst_12 = arith.constant 0.00999999977 : f32
    %10 = vector.broadcast %cst_12 : f32 to vector<128x256xf32>
    %11 = arith.mulf %10, %9 : vector<128x256xf32>
    %12 = arith.maximumf %9, %11 : vector<128x256xf32>
    %c128 = arith.constant 128 : index
    %c0_13 = arith.constant 0 : index
    %13 = vector.load %arg2[%c128, %c0_13] : memref<1280x256xbf16, #tpu.memory_space<vmem>>, vector<256x128xbf16>
    %14 = arith.truncf %12 : vector<128x256xf32> to vector<128x256xbf16>
    %cst_14 = arith.constant dense<0.000000e+00> : vector<128x128xf32>
    %15 = tpu.matmul %14, %13, %cst_14 {dimension_numbers = #tpu.dot_dimension_numbers<[1], [0], [0], [1], [0, 0, 1, 1], [], []>} : vector<128x256xbf16>, vector<256x128xbf16>, vector<128x128xf32> -> vector<128x128xf32>
    %c1 = arith.constant 1 : index
    %c0_15 = arith.constant 0 : index
    %16 = vector.load %arg3[%c1, %c0_15] : memref<8x256xf32, #tpu.memory_space<vmem>>, vector<1x128xf32>
    %17 = vector.broadcast %16 : vector<1x128xf32> to vector<128x128xf32>
    %18 = arith.addf %15, %17 : vector<128x128xf32>
    %cst_16 = arith.constant 0.00999999977 : f32
    %19 = vector.broadcast %cst_16 : f32 to vector<128x128xf32>
    %20 = arith.mulf %19, %18 : vector<128x128xf32>
    %21 = arith.maximumf %18, %20 : vector<128x128xf32>
    %c384 = arith.constant 384 : index
    %c0_17 = arith.constant 0 : index
    %22 = vector.load %arg2[%c384, %c0_17] : memref<1280x256xbf16, #tpu.memory_space<vmem>>, vector<128x128xbf16>
    %23 = arith.truncf %21 : vector<128x128xf32> to vector<128x128xbf16>
    %cst_18 = arith.constant dense<0.000000e+00> : vector<128x128xf32>
    %24 = tpu.matmul %23, %22, %cst_18 {dimension_numbers = #tpu.dot_dimension_numbers<[1], [0], [0], [1], [0, 0, 1, 1], [], []>} : vector<128x128xbf16>, vector<128x128xbf16>, vector<128x128xf32> -> vector<128x128xf32>
    %c2 = arith.constant 2 : index
    %c0_19 = arith.constant 0 : index
    %25 = vector.load %arg3[%c2, %c0_19] : memref<8x256xf32, #tpu.memory_space<vmem>>, vector<1x128xf32>
    %26 = vector.broadcast %25 : vector<1x128xf32> to vector<128x128xf32>
    %27 = arith.addf %24, %26 : vector<128x128xf32>
    %cst_20 = arith.constant 0.00999999977 : f32
    %28 = vector.broadcast %cst_20 : f32 to vector<128x128xf32>
    %29 = arith.mulf %28, %27 : vector<128x128xf32>
    %30 = arith.maximumf %27, %29 : vector<128x128xf32>
    %c512 = arith.constant 512 : index
    %c0_21 = arith.constant 0 : index
    %31 = vector.load %arg2[%c512, %c0_21] : memref<1280x256xbf16, #tpu.memory_space<vmem>>, vector<128x128xbf16>
    %32 = arith.truncf %30 : vector<128x128xf32> to vector<128x128xbf16>
    %cst_22 = arith.constant dense<0.000000e+00> : vector<128x128xf32>
    %33 = tpu.matmul %32, %31, %cst_22 {dimension_numbers = #tpu.dot_dimension_numbers<[1], [0], [0], [1], [0, 0, 1, 1], [], []>} : vector<128x128xbf16>, vector<128x128xbf16>, vector<128x128xf32> -> vector<128x128xf32>
    %c3 = arith.constant 3 : index
    %c0_23 = arith.constant 0 : index
    %34 = vector.load %arg3[%c3, %c0_23] : memref<8x256xf32, #tpu.memory_space<vmem>>, vector<1x128xf32>
    %35 = vector.broadcast %34 : vector<1x128xf32> to vector<128x128xf32>
    %36 = arith.addf %33, %35 : vector<128x128xf32>
    %cst_24 = arith.constant 0.00999999977 : f32
    %37 = vector.broadcast %cst_24 : f32 to vector<128x128xf32>
    %38 = arith.mulf %37, %36 : vector<128x128xf32>
    %39 = arith.maximumf %36, %38 : vector<128x128xf32>
    %c640 = arith.constant 640 : index
    %c0_25 = arith.constant 0 : index
    %40 = vector.load %arg2[%c640, %c0_25] : memref<1280x256xbf16, #tpu.memory_space<vmem>>, vector<128x128xbf16>
    %41 = arith.truncf %39 : vector<128x128xf32> to vector<128x128xbf16>
    %cst_26 = arith.constant dense<0.000000e+00> : vector<128x128xf32>
    %42 = tpu.matmul %41, %40, %cst_26 {dimension_numbers = #tpu.dot_dimension_numbers<[1], [0], [0], [1], [0, 0, 1, 1], [], []>} : vector<128x128xbf16>, vector<128x128xbf16>, vector<128x128xf32> -> vector<128x128xf32>
    %c4 = arith.constant 4 : index
    %c0_27 = arith.constant 0 : index
    %43 = vector.load %arg3[%c4, %c0_27] : memref<8x256xf32, #tpu.memory_space<vmem>>, vector<1x128xf32>
    %44 = vector.broadcast %43 : vector<1x128xf32> to vector<128x128xf32>
    %45 = arith.addf %42, %44 : vector<128x128xf32>
    %cst_28 = arith.constant 0.00999999977 : f32
    %46 = vector.broadcast %cst_28 : f32 to vector<128x128xf32>
    %47 = arith.mulf %46, %45 : vector<128x128xf32>
    %48 = arith.maximumf %45, %47 : vector<128x128xf32>
    %c768 = arith.constant 768 : index
    %c0_29 = arith.constant 0 : index
    %49 = vector.load %arg2[%c768, %c0_29] : memref<1280x256xbf16, #tpu.memory_space<vmem>>, vector<128x128xbf16>
    %50 = arith.truncf %48 : vector<128x128xf32> to vector<128x128xbf16>
    %cst_30 = arith.constant dense<0.000000e+00> : vector<128x128xf32>
    %51 = tpu.matmul %50, %49, %cst_30 {dimension_numbers = #tpu.dot_dimension_numbers<[1], [0], [0], [1], [0, 0, 1, 1], [], []>} : vector<128x128xbf16>, vector<128x128xbf16>, vector<128x128xf32> -> vector<128x128xf32>
    %c5 = arith.constant 5 : index
    %c0_31 = arith.constant 0 : index
    %52 = vector.load %arg3[%c5, %c0_31] : memref<8x256xf32, #tpu.memory_space<vmem>>, vector<1x128xf32>
    %53 = vector.broadcast %52 : vector<1x128xf32> to vector<128x128xf32>
    %54 = arith.addf %51, %53 : vector<128x128xf32>
    %cst_32 = arith.constant 0.00999999977 : f32
    %55 = vector.broadcast %cst_32 : f32 to vector<128x128xf32>
    %56 = arith.mulf %55, %54 : vector<128x128xf32>
    %57 = arith.maximumf %54, %56 : vector<128x128xf32>
    %c896 = arith.constant 896 : index
    %c0_33 = arith.constant 0 : index
    %58 = vector.load %arg2[%c896, %c0_33] : memref<1280x256xbf16, #tpu.memory_space<vmem>>, vector<128x256xbf16>
    %59 = arith.truncf %57 : vector<128x128xf32> to vector<128x128xbf16>
    %cst_34 = arith.constant dense<0.000000e+00> : vector<128x256xf32>
    %60 = tpu.matmul %59, %58, %cst_34 {dimension_numbers = #tpu.dot_dimension_numbers<[1], [0], [0], [1], [0, 0, 1, 1], [], []>} : vector<128x128xbf16>, vector<128x256xbf16>, vector<128x256xf32> -> vector<128x256xf32>
    %c6 = arith.constant 6 : index
    %c0_35 = arith.constant 0 : index
    %61 = vector.load %arg3[%c6, %c0_35] : memref<8x256xf32, #tpu.memory_space<vmem>>, vector<1x256xf32>
    %62 = vector.broadcast %61 : vector<1x256xf32> to vector<128x256xf32>
    %63 = arith.addf %60, %62 : vector<128x256xf32>
    %cst_36 = arith.constant 0.00999999977 : f32
    %64 = vector.broadcast %cst_36 : f32 to vector<128x256xf32>
    %65 = arith.mulf %64, %63 : vector<128x256xf32>
    %66 = arith.maximumf %63, %65 : vector<128x256xf32>
    %c1024 = arith.constant 1024 : index
    %c0_37 = arith.constant 0 : index
    %67 = vector.load %arg2[%c1024, %c0_37] : memref<1280x256xbf16, #tpu.memory_space<vmem>>, vector<256x128xbf16>
    %68 = arith.truncf %66 : vector<128x256xf32> to vector<128x256xbf16>
    %cst_38 = arith.constant dense<0.000000e+00> : vector<128x128xf32>
    %69 = tpu.matmul %68, %67, %cst_38 {dimension_numbers = #tpu.dot_dimension_numbers<[1], [0], [0], [1], [0, 0, 1, 1], [], []>} : vector<128x256xbf16>, vector<256x128xbf16>, vector<128x128xf32> -> vector<128x128xf32>
    %c7 = arith.constant 7 : index
    %c0_39 = arith.constant 0 : index
    %70 = vector.load %arg3[%c7, %c0_39] : memref<8x256xf32, #tpu.memory_space<vmem>>, vector<1x128xf32>
    %71 = vector.broadcast %70 : vector<1x128xf32> to vector<128x128xf32>
    %72 = arith.addf %69, %71 : vector<128x128xf32>
    %73 = vector.extract_strided_slice %72 {offsets = [0, 0], sizes = [128, 24], strides = [1, 1]} : vector<128x128xf32> to vector<128x24xf32>
    %c0_40 = arith.constant 0 : index
    %c0_41 = arith.constant 0 : index
    %74 = vector.load %arg4[%c0_40, %c0_41] : memref<128x24xf32, #tpu.memory_space<vmem>>, vector<128x24xf32>
    tpu.vector_store %arg4[%c0_40, %c0_41], %73 {strides = array<i32>} : memref<128x24xf32, #tpu.memory_space<vmem>>, vector<128x24xf32>,
    return
  }
  func.func @transform_0(%arg0: i32) -> (i32, i32) {
    %c0_i32 = arith.constant 0 : i32
    %c0_i32_0 = arith.constant 0 : i32
    return %arg0, %c0_i32 : i32, i32
  }
  func.func @transform_1(%arg0: i32) -> (i32, i32) {
    %c0_i32 = arith.constant 0 : i32
    %c0_i32_0 = arith.constant 0 : i32
    %c0_i32_1 = arith.constant 0 : i32
    return %c0_i32, %c0_i32_0 : i32, i32
  }
  func.func @transform_2(%arg0: i32) -> (i32, i32) {
    %c0_i32 = arith.constant 0 : i32
    %c0_i32_0 = arith.constant 0 : i32
    %c0_i32_1 = arith.constant 0 : i32
    return %c0_i32, %c0_i32_0 : i32, i32
  }
  func.func @transform_3(%arg0: i32) -> (i32, i32) {
    %c0_i32 = arith.constant 0 : i32
    %c0_i32_0 = arith.constant 0 : i32
    return %arg0, %c0_i32 : i32, i32
  }
}

</mosaic_0001>

<bundles_post_ra>
// kernel: ae24d_forward.1
= control target key start
LH: loop header
LB: loop body
LE: loop exit
PB: predicated region body
PF: predicated region fallthrough
CT: control target
= control target key end

     0   :  { %8 = vsyncpa [#allocation4], 0  ;;  %s2683_s12 = smov 0   ;;  %s2995_s0 = inlined_call_operand.vmem [shape: bf16[256,24], index: 0, kind: input, shape index: {}]   ;;  %s2996_s1 = inlined_call_operand.hbm [shape: bf16[1280,256], index: 1, kind: input, shape index: {}]   ;;  %s2997_s2 = inlined_call_operand.vmem [shape: f32[8,256], index: 2, kind: input, shape index: {}]   ;;  %s2998_s3 = inlined_call_operand.vmem [shape: f32[256,24], index: 3, kind: output, shape index: {}]  }
   0x1 LB: > { %s124_s15 = sshll.u32 %s2996_s1, 4  ;;  %s2061_s16 = sadd.s32 4294967295, %s2657_s12   ;;  %s2657_s12 = sphi %s2683_s12, %s14_s12   ;;  %s125_s15 = int_to_ptr.hbm [resolvable:$true] %s124_s15 }
   0x2   : > { %p2063_p0 = scmp.ge.s32.totalorder %s2657_s12, 1  ;;  %p113_p1 = scmp.lt.s32.totalorder %s2657_s12, 3 }
   0x3   : > { %p2603_p2 = scmp.eq.s32.totalorder %s2061_s16, 0  ;;  %s2659_s17 = smov [#allocation3]  }
   0x4   : > { %p114_p3 = pnand %p2063_p0, %p113_p1  ;;  %s126_s18 = sshll.u32 %s2659_s17, 4  ;;  %s127_s18 = int_to_ptr.vmem [resolvable:$true] %s126_s18 }
   0x5   : > { %s2660_s19 = smov 128   ;;  %s2661_s20 = smov 8  }
   0x6   : > { %p2599_p4 = pneg %p114_p3  ;;  %154 = sbr.rel (%p114_p3) target bundleno = 1318 (0x526), region = 32 }
   0x8   : > { %p2600_p5 = pnand %p2603_p2, %p2599_p4 }
   0xa   : > { %2602 = dma.hbm_to_vmem [thread:$0]  (!%p2600_p5), %s125_s15, 20480, %s127_s18, [#allocation4], %s2660_s19, %s2660_s19, %s2661_s20  }
   0xb   : > { %2652 = dma.done.wait (%p2603_p2), [#allocation4], 20480  }
   0xc   : > { %2654 = vsyncadd (%p2603_p2), [#allocation4], 4294946816  ;;  %s2068_s21 = sshll.u32 %s2061_s16, 4  ;;  %v2662_v0 = vmov 0   ;;  %v2162_v1 = vld [vmem:[#allocation3 + $0x70] sm:$0xf] }
   0xd   : > { %192 = vst [vmem:[#allocation2] sm:$0xf] %v2662_v0  ;;  %p180_p6 = scmp.lt.s32.totalorder %s2068_s21, 31  ;;  %v2514_v2 = vld [vmem:[#allocation3 + $0x74] sm:$0xf0]  ;;  %vm224_vm0 = vcmask 191488  }
   0xe   : > { %193 = vst [vmem:[#allocation2 + $0x4] sm:$0xf] %v2662_v0  ;;  %v2513_v3 = vld [vmem:[#allocation3 + $0x74] sm:$0xf]  ;;  %v2163_v4 = vor.u32 %v2514_v2, %v2162_v1  ;;  %v2164_v5 = vld [vmem:[#allocation3 + $0x78] sm:$0xf0] }
   0xf   : > { %194 = vst [vmem:[#allocation2 + $0x8] sm:$0xf] %v2662_v0  ;;  %s3000_s21 = smov (!%p180_p6, %s2068_s21), 31  ;;  %v2154_v6 = vld [vmem:[#allocation3 + $0x60] sm:$0xf]  ;;  %v2167_v8 = vor.u32 %v2513_v3, %v2164_v5  ;;  %vm1976_vm1 = vcmask 195584  }
  0x10   : > { %195 = vst [vmem:[#allocation2 + $0xc] sm:$0xf] %v2662_v0  ;;  %v2512_v7 = vld [vmem:[#allocation3 + $0x64] sm:$0xf0]  ;;  %v2511_v9 = vld [vmem:[#allocation3 + $0x64] sm:$0xf]  ;;  %407 = vmatpush.bf16.msra.mxu0 %v2163_v4 }
  0x11   : > { %196 = vst [vmem:[#allocation2 + $0x10] sm:$0xf] %v2662_v0  ;;  %v2156_v10 = vld [vmem:[#allocation3 + $0x68] sm:$0xf0]  ;;  %v2155_v11 = vor.u32 %v2512_v7, %v2154_v6  ;;  %456 = vmatpush.bf16.msra.mxu1 %v2167_v8  ;;  %v2146_v13 = vld [vmem:[#allocation3 + $0x50] sm:$0xf] }
  0x12   : > { %197 = vst [vmem:[#allocation2 + $0x14] sm:$0xf] %v2662_v0  ;;  %v2159_v12 = vor.u32 %v2511_v9, %v2156_v10  ;;  %v2510_v14 = vld [vmem:[#allocation3 + $0x54] sm:$0xf0]  ;;  %s2069_s22 = sshll.u32 %s3000_s21, 2  ;;  %s2071_s16 = sshll.u32 %s3000_s21, 3 }
  0x13   : > { %v2509_v15 = vld [vmem:[#allocation3 + $0x54] sm:$0xf]  ;;  %v2148_v16 = vld [vmem:[#allocation3 + $0x58] sm:$0xf0]  ;;  %v2147_v17 = vor.u32 %v2510_v14, %v2146_v13  ;;  %s2706_s25 = scalar_lea.vmem %s2995_s0, %s2069_s22  ;;  %v2138_v19 = vld [vmem:[#allocation3 + $0x40] sm:$0xf]  ;;  %s2943_s19 = scalar_lea.vmem %s2998_s3, %s2071_s16 }
  0x14   : > { %408 = vmatpush.bf16.msra.mxu0 %v2155_v11  ;;  %v2151_v18 = vor.u32 %v2509_v15, %v2148_v16  ;;  %v2508_v20 = vld [vmem:[#allocation3 + $0x44] sm:$0xf0]  ;;  %v2507_v21 = vld [vmem:[#allocation3 + $0x44] sm:$0xf]  ;;  %v2140_v22 = vld [vmem:[#allocation3 + $0x48] sm:$0xf0] }
  0x15   : > { %457 = vmatpush.bf16.msra.mxu1 %v2159_v12  ;;  %v208_v23 = vld [vmem:[%s2706_s25] sm:$0xf]  ;;  %v2139_v24 = vor.u32 %v2508_v20, %v2138_v19  ;;  %v209_v25 = vld [vmem:[%s2706_s25 + $0x4] sm:$0xf]  ;;  %v2143_v26 = vor.u32 %v2507_v21, %v2140_v22  ;;  %v2130_v27 = vld [vmem:[#allocation3 + $0x30] sm:$0xf] }
  0x16   : > { %225 = vst.msk [vmem:[#allocation2] sm:$0xf] %vm224_vm0, %v208_v23  ;;  %v2506_v28 = vld [vmem:[#allocation3 + $0x34] sm:$0xf0]  ;;  %v2505_v29 = vld [vmem:[#allocation3 + $0x34] sm:$0xf] }
  0x17   : > { %226 = vst.msk [vmem:[#allocation2 + $0x4] sm:$0xf] %vm224_vm0, %v209_v25  ;;  %v2132_v30 = vld [vmem:[#allocation3 + $0x38] sm:$0xf0]  ;;  %v2131_v31 = vor.u32 %v2506_v28, %v2130_v27  ;;  %v2122_v33 = vld [vmem:[#allocation3 + $0x20] sm:$0xf] }
  0x18   : > { %409 = vmatpush.bf16.msra.mxu0 %v2147_v17  ;;  %198 = vst [vmem:[#allocation2 + $0x18] sm:$0xf] %v2662_v0  ;;  %v2135_v32 = vor.u32 %v2505_v29, %v2132_v30  ;;  %v2504_v34 = vld [vmem:[#allocation3 + $0x24] sm:$0xf0]  ;;  %v2503_v35 = vld [vmem:[#allocation3 + $0x24] sm:$0xf] }
  0x19   : > { %458 = vmatpush.bf16.msra.mxu1 %v2151_v18  ;;  %199 = vst [vmem:[#allocation2 + $0x1c] sm:$0xf] %v2662_v0  ;;  %v2124_v36 = vld [vmem:[#allocation3 + $0x28] sm:$0xf0]  ;;  %v2123_v37 = vor.u32 %v2504_v34, %v2122_v33  ;;  %v2114_v38 = vld [vmem:[#allocation3 + $0x10] sm:$0xf] }
  0x1a   : > { %200 = vst [vmem:[#allocation2 + $0x20] sm:$0xf] %v2662_v0  ;;  %v2502_v39 = vld [vmem:[#allocation3 + $0x14] sm:$0xf0]  ;;  %v2127_v40 = vor.u32 %v2503_v35, %v2124_v36  ;;  %v2501_v41 = vld [vmem:[#allocation3 + $0x14] sm:$0xf] }
  0x1b   : > { %201 = vst [vmem:[#allocation2 + $0x24] sm:$0xf] %v2662_v0  ;;  %v210_v42 = vld [vmem:[%s2706_s25 + $0x8] sm:$0xf]  ;;  %v2116_v43 = vld [vmem:[#allocation3 + $0x18] sm:$0xf0]  ;;  %v2115_v46 = vor.u32 %v2502_v39, %v2114_v38 }
  0x1c   : > { %410 = vmatpush.bf16.msra.mxu0 %v2139_v24  ;;  %202 = vst [vmem:[#allocation2 + $0x28] sm:$0xf] %v2662_v0  ;;  %v211_v44 = vld [vmem:[%s2706_s25 + $0xc] sm:$0xf]  ;;  %v212_v45 = vld [vmem:[%s2706_s25 + $0x10] sm:$0xf]  ;;  %v2119_v48 = vor.u32 %v2501_v41, %v2116_v43 }
  0x1d   : > { %459 = vmatpush.bf16.msra.mxu1 %v2143_v26  ;;  %203 = vst [vmem:[#allocation2 + $0x2c] sm:$0xf] %v2662_v0  ;;  %v213_v47 = vld [vmem:[%s2706_s25 + $0x14] sm:$0xf]  ;;  %v2106_v49 = vld [vmem:[#allocation3] sm:$0xf] }
  0x1e   : > { %204 = vst [vmem:[#allocation2 + $0x30] sm:$0xf] %v2662_v0  ;;  %v2500_v50 = vld [vmem:[#allocation3 + $0x4] sm:$0xf0]  ;;  %v2499_v51 = vld [vmem:[#allocation3 + $0x4] sm:$0xf] }
  0x1f   : > { %205 = vst [vmem:[#allocation2 + $0x34] sm:$0xf] %v2662_v0  ;;  %v2108_v52 = vld [vmem:[#allocation3 + $0x8] sm:$0xf0]  ;;  %v2107_v53 = vor.u32 %v2500_v50, %v2106_v49  ;;  %v2491_v55 = vld [vmem:[#allocation2] sm:$0xff] }
  0x20   : > { %411 = vmatpush.bf16.msra.mxu0 %v2131_v31  ;;  %206 = vst [vmem:[#allocation2 + $0x38] sm:$0xf] %v2662_v0  ;;  %v2111_v54 = vor.u32 %v2499_v51, %v2108_v52  ;;  %v214_v56 = vld [vmem:[%s2706_s25 + $0x18] sm:$0xf]  ;;  %v215_v57 = vld [vmem:[%s2706_s25 + $0x1c] sm:$0xf] }
  0x21   : > { %460 = vmatpush.bf16.msra.mxu1 %v2135_v32  ;;  %207 = vst [vmem:[#allocation2 + $0x3c] sm:$0xf] %v2662_v0  ;;  %v216_v59 = vld [vmem:[%s2706_s25 + $0x20] sm:$0xf]  ;;  %v217_v60 = vld [vmem:[%s2706_s25 + $0x24] sm:$0xf] }
  0x22   : > { %227 = vst.msk [vmem:[#allocation2 + $0x8] sm:$0xf] %vm224_vm0, %v210_v42  ;;  %v218_v62 = vld [vmem:[%s2706_s25 + $0x28] sm:$0xf]  ;;  %v219_v63 = vld [vmem:[%s2706_s25 + $0x2c] sm:$0xf] }
  0x23   : > { %228 = vst.msk [vmem:[#allocation2 + $0xc] sm:$0xf] %vm224_vm0, %v211_v44  ;;  %v220_v1 = vld [vmem:[%s2706_s25 + $0x30] sm:$0xf]  ;;  %v221_v2 = vld [vmem:[%s2706_s25 + $0x34] sm:$0xf] }
  0x24   : > { %412 = vmatpush.bf16.msra.mxu0 %v2123_v37  ;;  %229 = vst.msk [vmem:[#allocation2 + $0x10] sm:$0xf] %vm224_vm0, %v212_v45  ;;  %v2198_v4 = vld [vmem:[#allocation3 + $0xf0] sm:$0xf]  ;;  %v2522_v5 = vld [vmem:[#allocation3 + $0xf4] sm:$0xf0] }
  0x25   : > { %461 = vmatpush.bf16.msra.mxu1 %v2127_v40  ;;  %230 = vst.msk [vmem:[#allocation2 + $0x14] sm:$0xf] %vm224_vm0, %v213_v47  ;;  %v2230_v6 = vld [vmem:[#allocation3 + $0x170] sm:$0xf]  ;;  %v2199_v7 = vor.u32 %v2522_v5, %v2198_v4  ;;  %v2530_v8 = vld [vmem:[#allocation3 + $0x174] sm:$0xf0] }
  0x26   : > { %231 = vst.msk [vmem:[#allocation2 + $0x18] sm:$0xf] %vm224_vm0, %v214_v56  ;;  %v222_v9 = vld [vmem:[%s2706_s25 + $0x38] sm:$0xf]  ;;  %v223_v10 = vld [vmem:[%s2706_s25 + $0x3c] sm:$0xf]  ;;  %v2231_v11 = vor.u32 %v2530_v8, %v2230_v6 }
  0x27   : > { %232 = vst.msk [vmem:[#allocation2 + $0x1c] sm:$0xf] %vm224_vm0, %v215_v57  ;;  %714 = vmatpush.bf16.msra.mxu2 %v2199_v7  ;;  %v2194_v13 = vld [vmem:[#allocation3 + $0xe0] sm:$0xf]  ;;  %v2521_v14 = vld [vmem:[#allocation3 + $0xe4] sm:$0xf0] }
  0x28   : > { %413 = vmatpush.bf16.msra.mxu0 %v2115_v46  ;;  %233 = vst.msk [vmem:[#allocation2 + $0x20] sm:$0xf] %vm224_vm0, %v216_v59  ;;  %763 = vmatpush.bf16.msra.mxu3 %v2231_v11  ;;  %v2226_v15 = vld [vmem:[#allocation3 + $0x160] sm:$0xf]  ;;  %v2195_v16 = vor.u32 %v2521_v14, %v2194_v13  ;;  %v2529_v17 = vld [vmem:[#allocation3 + $0x164] sm:$0xf0] }
  0x29   : > { %462 = vmatpush.bf16.msra.mxu1 %v2119_v48  ;;  %234 = vst.msk [vmem:[#allocation2 + $0x24] sm:$0xf] %vm224_vm0, %v217_v60  ;;  %v2190_v18 = vld [vmem:[#allocation3 + $0xd0] sm:$0xf]  ;;  %v2520_v19 = vld [vmem:[#allocation3 + $0xd4] sm:$0xf0]  ;;  %v2227_v20 = vor.u32 %v2529_v17, %v2226_v15 }
  0x2a   : > { %v2492_v58 = vld [vmem:[#allocation2 + $0x8] sm:$0xff]  ;;  %235 = vst.msk [vmem:[#allocation2 + $0x28] sm:$0xf] %vm224_vm0, %v218_v62  ;;  %v2222_v21 = vld [vmem:[#allocation3 + $0x150] sm:$0xf]  ;;  %v2191_v23 = vor.u32 %v2520_v19, %v2190_v18 }
  0x2b   : > { %236 = vst.msk [vmem:[#allocation2 + $0x2c] sm:$0xf] %vm224_vm0, %v219_v63  ;;  %v2528_v22 = vld [vmem:[#allocation3 + $0x154] sm:$0xf0]  ;;  %715 = vmatpush.bf16.msra.mxu2 %v2195_v16  ;;  %v2186_v25 = vld [vmem:[#allocation3 + $0xc0] sm:$0xf] }
  0x2c   : > { %414 = vmatpush.bf16.msra.mxu0 %v2107_v53  ;;  %v2493_v61 = vld [vmem:[#allocation2 + $0x10] sm:$0xff]  ;;  %237 = vst.msk [vmem:[#allocation2 + $0x30] sm:$0xf] %vm224_vm0, %v220_v1  ;;  %764 = vmatpush.bf16.msra.mxu3 %v2227_v20  ;;  %v2223_v24 = vor.u32 %v2528_v22, %v2222_v21  ;;  %v2519_v26 = vld [vmem:[#allocation3 + $0xc4] sm:$0xf0] }
  0x2d   : > { %463 = vmatpush.bf16.msra.mxu1 %v2111_v54  ;;  %238 = vst.msk [vmem:[#allocation2 + $0x34] sm:$0xf] %vm224_vm0, %v221_v2  ;;  %v2218_v27 = vld [vmem:[#allocation3 + $0x140] sm:$0xf]  ;;  %v2527_v28 = vld [vmem:[#allocation3 + $0x144] sm:$0xf0]  ;;  %v2187_v29 = vor.u32 %v2519_v26, %v2186_v25 }
  0x2e   : > { %v2494_v0 = vld [vmem:[#allocation2 + $0x18] sm:$0xff]  ;;  %239 = vst.msk [vmem:[#allocation2 + $0x38] sm:$0xf] %vm224_vm0, %v222_v9  ;;  %v2219_v30 = vor.u32 %v2527_v28, %v2218_v27  ;;  %v2182_v32 = vld [vmem:[#allocation3 + $0xb0] sm:$0xf] }
  0x2f   : > { %415 = vmatmul.bf16.vlgmr.msra.gmra.mxu0 %v2491_v55  ;;  %240 = vst.msk [vmem:[#allocation2 + $0x3c] sm:$0xf] %vm224_vm0, %v223_v10  ;;  %716 = vmatpush.bf16.msra.mxu2 %v2191_v23  ;;  %v2518_v33 = vld [vmem:[#allocation3 + $0xb4] sm:$0xf0]  ;;  %v2214_v35 = vld [vmem:[#allocation3 + $0x130] sm:$0xf] }
  0x30   : > { %464 = vmatmul.bf16.vlgmr.msra.gmra.mxu1 %v2491_v55  ;;  %v2495_v3 = vld [vmem:[#allocation2 + $0x20] sm:$0xff]  ;;  %765 = vmatpush.bf16.msra.mxu3 %v2223_v24  ;;  %v2183_v34 = vor.u32 %v2518_v33, %v2182_v32  ;;  %v2526_v36 = vld [vmem:[#allocation3 + $0x134] sm:$0xf0]  ;;  %v2517_v39 = vld [vmem:[#allocation3 + $0xa4] sm:$0xf0] }
  0x31   : > { %v2215_v37 = vor.u32 %v2526_v36, %v2214_v35  ;;  %v2178_v38 = vld [vmem:[#allocation3 + $0xa0] sm:$0xf]  ;;  %v2525_v42 = vld [vmem:[#allocation3 + $0x124] sm:$0xf0]  ;;  %v2174_v44 = vld [vmem:[#allocation3 + $0x90] sm:$0xf] }
  0x32   : > { %v2496_v12 = vld [vmem:[#allocation2 + $0x28] sm:$0xff]  ;;  %v2210_v40 = vld [vmem:[#allocation3 + $0x120] sm:$0xf]  ;;  %v2179_v41 = vor.u32 %v2517_v39, %v2178_v38  ;;  %v2516_v45 = vld [vmem:[#allocation3 + $0x94] sm:$0xf0] }
  0x33   : > { %717 = vmatpush.bf16.msra.mxu2 %v2187_v29  ;;  %v2211_v43 = vor.u32 %v2525_v42, %v2210_v40  ;;  %v2206_v46 = vld [vmem:[#allocation3 + $0x110] sm:$0xf]  ;;  %v2175_v47 = vor.u32 %v2516_v45, %v2174_v44  ;;  %v2524_v48 = vld [vmem:[#allocation3 + $0x114] sm:$0xf0]  ;;  %v2170_v50 = vld [vmem:[#allocation3 + $0x80] sm:$0xf] }
  0x34   : > { %v2497_v31 = vld [vmem:[#allocation2 + $0x30] sm:$0xff]  ;;  %766 = vmatpush.bf16.msra.mxu3 %v2219_v30  ;;  %v2207_v49 = vor.u32 %v2524_v48, %v2206_v46  ;;  %v2515_v51 = vld [vmem:[#allocation3 + $0x84] sm:$0xf0]  ;;  %v2202_v52 = vld [vmem:[#allocation3 + $0x100] sm:$0xf] }
  0x35   : > { %v2171_v53 = vor.u32 %v2515_v51, %v2170_v50  ;;  %v2523_v54 = vld [vmem:[#allocation3 + $0x104] sm:$0xf0]  ;;  %v2538_v1 = vld [vmem:[#allocation3 + $0x1f4] sm:$0xf0]  ;;  %v2258_v21 = vld [vmem:[#allocation3 + $0x1e0] sm:$0xf] }
  0x36   : > { %v2203_v55 = vor.u32 %v2523_v54, %v2202_v52  ;;  %v2498_v56 = vld [vmem:[#allocation2 + $0x38] sm:$0xff]  ;;  %v273_v57 = vld [vmem:[%s2997_s2] ss:$8 sm:$0x3]  ;;  %v2254_v42 = vld [vmem:[#allocation3 + $0x1d0] sm:$0xf] }
  0x37   : > { %718 = vmatpush.bf16.msra.mxu2 %v2183_v34  ;;  %v2753_v59 = vperm.slane %v273_v57, 0  ;;  %v2537_v22 = vld [vmem:[#allocation3 + $0x1e4] sm:$0xf0] }
  0x38   : > { %767 = vmatpush.bf16.msra.mxu3 %v2215_v37  ;;  %v2259_v23 = vor.u32 %v2537_v22, %v2258_v21  ;;  %v2246_v22 = vld [vmem:[#allocation3 + $0x1b0] sm:$0xf] }
  0x3b   : > { %719 = vmatpush.bf16.msra.mxu2 %v2179_v41 }
  0x3c   : > { %768 = vmatpush.bf16.msra.mxu3 %v2211_v43  ;;  %v2536_v43 = vld [vmem:[#allocation3 + $0x1d4] sm:$0xf0] }
  0x3d   : > { %v2255_v44 = vor.u32 %v2536_v43, %v2254_v42  ;;  %v2242_v43 = vld [vmem:[#allocation3 + $0x1a0] sm:$0xf] }
  0x3f   : > { %420 = vmatmul.bf16.gmra.mxu0 %v2492_v58  ;;  %720 = vmatpush.bf16.msra.mxu2 %v2175_v47 }
  0x40   : > { %469 = vmatmul.bf16.gmra.mxu1 %v2492_v58  ;;  %769 = vmatpush.bf16.msra.mxu3 %v2207_v49 }
  0x43   : > { %721 = vmatpush.bf16.msra.mxu2 %v2171_v53 }
  0x44   : > { %770 = vmatpush.bf16.msra.mxu3 %v2203_v55 }
  0x4f   : > { %425 = vmatmul.bf16.gmra.mxu0 %v2493_v61 }
  0x50   : > { %474 = vmatmul.bf16.gmra.mxu1 %v2493_v61  ;;  %v2755_v61 = vperm.slane %v273_v57, 1 }
  0x5f   : > { %430 = vmatmul.bf16.gmra.mxu0 %v2494_v0 }
  0x60   : > { %479 = vmatmul.bf16.gmra.mxu1 %v2494_v0  ;;  %v2262_v0 = vld [vmem:[#allocation3 + $0x1f0] sm:$0xf] }
  0x61   : > { %v2263_v2 = vor.u32 %v2538_v1, %v2262_v0  ;;  %v2250_v1 = vld [vmem:[#allocation3 + $0x1c0] sm:$0xf] }
  0x63   : > { %917 = vmatpush.bf16.msrb.mxu0 %v2263_v2  ;;  %v2535_v2 = vld [vmem:[#allocation3 + $0x1c4] sm:$0xf0] }
  0x67   : > { %918 = vmatpush.bf16.msrb.mxu0 %v2259_v23  ;;  %v2534_v23 = vld [vmem:[#allocation3 + $0x1b4] sm:$0xf0] }
  0x6b   : > { %919 = vmatpush.bf16.msrb.mxu0 %v2255_v44  ;;  %v2533_v44 = vld [vmem:[#allocation3 + $0x1a4] sm:$0xf0] }
  0x6f   : > { %435 = vmatmul.bf16.gmra.mxu0 %v2495_v3 }
  0x70   : > { %484 = vmatmul.bf16.gmra.mxu1 %v2495_v3 }
  0x7f   : > { %440 = vmatmul.bf16.gmra.mxu0 %v2496_v12 }
  0x80   : > { %489 = vmatmul.bf16.gmra.mxu1 %v2496_v12 }
  0x8f   : > { %445 = vmatmul.bf16.gmra.mxu0 %v2497_v31 }
  0x90   : > { %494 = vmatmul.bf16.gmra.mxu1 %v2497_v31 }
  0x9f   : > { %450 = vmatmul.bf16.gmra.mxu0 %v2498_v56 }
  0xa0   : > { %499 = vmatmul.bf16.gmra.mxu1 %v2498_v56 }
  0xac   : > { %v416_v58 = vpop.f32.mrf.mxu0 }
  0xad   : > { %v465_v60 = vpop.f32.mrf.mxu1  ;;  %v417_v62 = vadd.f32 %v416_v58, %v2753_v59 }
  0xae   : > { %v466_v63 = vadd.f32 %v465_v60, %v2755_v61 }
  0xaf   : > { %v505_v4 = vmul.f32 0.01, %v417_v62 }
  0xb0   : > { %v506_v7 = vmul.f32 0.01, %v466_v63 }
  0xb1   : > { %v537_v11 = vmax.f32 %v417_v62, %v505_v4 }
  0xb2   : > { %v538_v13 = vmax.f32 %v466_v63, %v506_v7 }
  0xb4   : > { %v418_v3 = vpop.f32.mrf.mxu0 }
  0xb5   : > { %v419_v5 = vadd.f32 %v418_v3, %v2753_v59  ;;  %v467_v6 = vpop.f32.mrf.mxu1  ;;  %v2251_v3 = vor.u32 %v2535_v2, %v2250_v1  ;;  %v2532_v1 = vld [vmem:[#allocation3 + $0x194] sm:$0xf0] }
  0xb6   : > { %v468_v8 = vadd.f32 %v467_v6, %v2755_v61 }
  0xb7   : > { %v507_v9 = vmul.f32 0.01, %v419_v5  ;;  %920 = vmatpush.bf16.msrb.mxu0 %v2251_v3 }
  0xb8   : > { %v508_v10 = vmul.f32 0.01, %v468_v8 }
  0xb9   : > { %v539_v12 = vmax.f32 %v419_v5, %v507_v9 }
  0xba   : > { %v540_v14 = vmax.f32 %v468_v8, %v508_v10 }
  0xbb   : > { %v601_v15 = vpack.c.bf16 %v539_v12, %v537_v11 }
  0xbc   : > { %v421_v16 = vpop.f32.mrf.mxu0  ;;  %v602_v17 = vpack.c.bf16 %v540_v14, %v538_v13 }
  0xbd   : > { %v470_v18 = vpop.f32.mrf.mxu1  ;;  %722 = vmatmul.bf16.vlgmr.msra.gmra.mxu2 %v601_v15  ;;  %v422_v19 = vadd.f32 %v421_v16, %v2753_v59 }
  0xbe   : > { %771 = vmatmul.bf16.vlgmr.msra.gmra.mxu3 %v602_v17  ;;  %v471_v20 = vadd.f32 %v470_v18, %v2755_v61 }
  0xbf   : > { %v509_v25 = vmul.f32 0.01, %v422_v19 }
  0xc0   : > { %v510_v28 = vmul.f32 0.01, %v471_v20 }
  0xc1   : > { %v541_v32 = vmax.f32 %v422_v19, %v509_v25 }
  0xc2   : > { %v542_v34 = vmax.f32 %v471_v20, %v510_v28 }
  0xc4   : > { %v423_v24 = vpop.f32.mrf.mxu0 }
  0xc5   : > { %v424_v26 = vadd.f32 %v423_v24, %v2753_v59  ;;  %v472_v27 = vpop.f32.mrf.mxu1  ;;  %v2247_v24 = vor.u32 %v2534_v23, %v2246_v22 }
  0xc6   : > { %v473_v29 = vadd.f32 %v472_v27, %v2755_v61 }
  0xc7   : > { %v511_v30 = vmul.f32 0.01, %v424_v26  ;;  %921 = vmatpush.bf16.msrb.mxu0 %v2247_v24 }
  0xc8   : > { %v512_v31 = vmul.f32 0.01, %v473_v29 }
  0xc9   : > { %v543_v33 = vmax.f32 %v424_v26, %v511_v30 }
  0xca   : > { %v544_v35 = vmax.f32 %v473_v29, %v512_v31 }
  0xcb   : > { %v603_v36 = vpack.c.bf16 %v543_v33, %v541_v32 }
  0xcc   : > { %v426_v37 = vpop.f32.mrf.mxu0  ;;  %v604_v38 = vpack.c.bf16 %v544_v35, %v542_v34 }
  0xcd   : > { %v475_v39 = vpop.f32.mrf.mxu1  ;;  %727 = vmatmul.bf16.gmra.mxu2 %v603_v36  ;;  %v427_v40 = vadd.f32 %v426_v37, %v2753_v59 }
  0xce   : > { %776 = vmatmul.bf16.gmra.mxu3 %v604_v38  ;;  %v476_v41 = vadd.f32 %v475_v39, %v2755_v61 }
  0xcf   : > { %v513_v46 = vmul.f32 0.01, %v427_v40 }
  0xd0   : > { %v514_v49 = vmul.f32 0.01, %v476_v41 }
  0xd1   : > { %v545_v53 = vmax.f32 %v427_v40, %v513_v46 }
  0xd2   : > { %v546_v55 = vmax.f32 %v476_v41, %v514_v49 }
  0xd4   : > { %v428_v45 = vpop.f32.mrf.mxu0 }
  0xd5   : > { %v429_v47 = vadd.f32 %v428_v45, %v2753_v59  ;;  %v477_v48 = vpop.f32.mrf.mxu1  ;;  %v2243_v45 = vor.u32 %v2533_v44, %v2242_v43  ;;  %v2294_v43 = vld [vmem:[#allocation3 + $0x270] sm:$0xf]  ;;  %v2546_v44 = vld [vmem:[#allocation3 + $0x274] sm:$0xf0] }
  0xd6   : > { %v478_v50 = vadd.f32 %v477_v48, %v2755_v61 }
  0xd7   : > { %v515_v51 = vmul.f32 0.01, %v429_v47  ;;  %922 = vmatpush.bf16.msrb.mxu0 %v2243_v45 }
  0xd8   : > { %v516_v52 = vmul.f32 0.01, %v478_v50 }
  0xd9   : > { %v547_v54 = vmax.f32 %v429_v47, %v515_v51 }
  0xda   : > { %v548_v56 = vmax.f32 %v478_v50, %v516_v52 }
  0xdb   : > { %v605_v57 = vpack.c.bf16 %v547_v54, %v545_v53 }
  0xdc   : > { %v431_v58 = vpop.f32.mrf.mxu0  ;;  %v606_v60 = vpack.c.bf16 %v548_v56, %v546_v55 }
  0xdd   : > { %v480_v62 = vpop.f32.mrf.mxu1  ;;  %732 = vmatmul.bf16.gmra.mxu2 %v605_v57  ;;  %v432_v63 = vadd.f32 %v431_v58, %v2753_v59 }
  0xde   : > { %781 = vmatmul.bf16.gmra.mxu3 %v606_v60  ;;  %v481_v0 = vadd.f32 %v480_v62, %v2755_v61 }
  0xdf   : > { %v517_v5 = vmul.f32 0.01, %v432_v63 }
  0xe0   : > { %v518_v8 = vmul.f32 0.01, %v481_v0 }
  0xe1   : > { %v549_v12 = vmax.f32 %v432_v63, %v517_v5 }
  0xe2   : > { %v550_v14 = vmax.f32 %v481_v0, %v518_v8  ;;  %v2238_v0 = vld [vmem:[#allocation3 + $0x190] sm:$0xf] }
  0xe3   : > { %v2239_v2 = vor.u32 %v2532_v1, %v2238_v0 }
  0xe4   : > { %v433_v4 = vpop.f32.mrf.mxu0 }
  0xe5   : > { %v434_v6 = vadd.f32 %v433_v4, %v2753_v59  ;;  %v482_v7 = vpop.f32.mrf.mxu1  ;;  %923 = vmatpush.bf16.msrb.mxu0 %v2239_v2 }
  0xe6   : > { %v483_v9 = vadd.f32 %v482_v7, %v2755_v61 }
  0xe7   : > { %v519_v10 = vmul.f32 0.01, %v434_v6 }
  0xe8   : > { %v520_v11 = vmul.f32 0.01, %v483_v9 }
  0xe9   : > { %v551_v13 = vmax.f32 %v434_v6, %v519_v10 }
  0xea   : > { %v552_v15 = vmax.f32 %v483_v9, %v520_v11 }
  0xeb   : > { %v607_v16 = vpack.c.bf16 %v551_v13, %v549_v12 }
  0xec   : > { %v436_v17 = vpop.f32.mrf.mxu0  ;;  %v608_v18 = vpack.c.bf16 %v552_v15, %v550_v14 }
  0xed   : > { %v485_v19 = vpop.f32.mrf.mxu1  ;;  %737 = vmatmul.bf16.gmra.mxu2 %v607_v16  ;;  %v437_v20 = vadd.f32 %v436_v17, %v2753_v59 }
  0xee   : > { %786 = vmatmul.bf16.gmra.mxu3 %v608_v18  ;;  %v486_v21 = vadd.f32 %v485_v19, %v2755_v61 }
  0xef   : > { %v521_v26 = vmul.f32 0.01, %v437_v20 }
  0xf0   : > { %v522_v29 = vmul.f32 0.01, %v486_v21 }
  0xf1   : > { %v553_v33 = vmax.f32 %v437_v20, %v521_v26 }
  0xf2   : > { %v554_v35 = vmax.f32 %v486_v21, %v522_v29 }
  0xf4   : > { %v438_v25 = vpop.f32.mrf.mxu0 }
  0xf5   : > { %v439_v27 = vadd.f32 %v438_v25, %v2753_v59  ;;  %v487_v28 = vpop.f32.mrf.mxu1 }
  0xf6   : > { %v488_v30 = vadd.f32 %v487_v28, %v2755_v61 }
  0xf7   : > { %v523_v31 = vmul.f32 0.01, %v439_v27 }
  0xf8   : > { %v524_v32 = vmul.f32 0.01, %v488_v30 }
  0xf9   : > { %v555_v34 = vmax.f32 %v439_v27, %v523_v31  ;;  %v2531_v31 = vld [vmem:[#allocation3 + $0x184] sm:$0xf0] }
  0xfa   : > { %v556_v36 = vmax.f32 %v488_v30, %v524_v32  ;;  %v2234_v30 = vld [vmem:[#allocation3 + $0x180] sm:$0xf] }
  0xfb   : > { %v609_v37 = vpack.c.bf16 %v555_v34, %v553_v33  ;;  %v2235_v33 = vor.u32 %v2531_v31, %v2234_v30  ;;  %v2543_v30 = vld [vmem:[#allocation3 + $0x244] sm:$0xf0] }
  0xfc   : > { %v441_v38 = vpop.f32.mrf.mxu0  ;;  %v610_v39 = vpack.c.bf16 %v556_v36, %v554_v35 }
  0xfd   : > { %v490_v40 = vpop.f32.mrf.mxu1  ;;  %742 = vmatmul.bf16.gmra.mxu2 %v609_v37  ;;  %v442_v41 = vadd.f32 %v441_v38, %v2753_v59  ;;  %924 = vmatpush.bf16.msrb.mxu0 %v2235_v33 }
  0xfe   : > { %791 = vmatmul.bf16.gmra.mxu3 %v610_v39  ;;  %v491_v42 = vadd.f32 %v490_v40, %v2755_v61 }
  0xff   : > { %v525_v47 = vmul.f32 0.01, %v442_v41 }
 0x100   : > { %v526_v50 = vmul.f32 0.01, %v491_v42 }
 0x101   : > { %v557_v54 = vmax.f32 %v442_v41, %v525_v47 }
 0x102   : > { %v558_v56 = vmax.f32 %v491_v42, %v526_v50 }
 0x104   : > { %v443_v46 = vpop.f32.mrf.mxu0 }
 0x105   : > { %v444_v48 = vadd.f32 %v443_v46, %v2753_v59  ;;  %v492_v49 = vpop.f32.mrf.mxu1  ;;  %v2295_v46 = vor.u32 %v2546_v44, %v2294_v43  ;;  %v2278_v44 = vld [vmem:[#allocation3 + $0x230] sm:$0xf] }
 0x106   : > { %v493_v51 = vadd.f32 %v492_v49, %v2755_v61 }
 0x107   : > { %v527_v52 = vmul.f32 0.01, %v444_v48  ;;  %1071 = vmatpush.bf16.msrb.mxu1 %v2295_v46 }
 0x108   : > { %v528_v53 = vmul.f32 0.01, %v493_v51 }
 0x109   : > { %v559_v55 = vmax.f32 %v444_v48, %v527_v52 }
 0x10a   : > { %v560_v57 = vmax.f32 %v493_v51, %v528_v53 }
 0x10b   : > { %v611_v58 = vpack.c.bf16 %v559_v55, %v557_v54 }
 0x10c   : > { %v446_v60 = vpop.f32.mrf.mxu0  ;;  %v612_v62 = vpack.c.bf16 %v560_v57, %v558_v56 }
 0x10d   : > { %v495_v63 = vpop.f32.mrf.mxu1  ;;  %747 = vmatmul.bf16.gmra.mxu2 %v611_v58  ;;  %v447_v3 = vadd.f32 %v446_v60, %v2753_v59  ;;  %v2290_v60 = vld [vmem:[#allocation3 + $0x260] sm:$0xf] }
 0x10e   : > { %796 = vmatmul.bf16.gmra.mxu3 %v612_v62  ;;  %v496_v4 = vadd.f32 %v495_v63, %v2755_v61  ;;  %v2545_v62 = vld [vmem:[#allocation3 + $0x264] sm:$0xf0] }
 0x10f   : > { %v529_v6 = vmul.f32 0.01, %v447_v3  ;;  %v2291_v0 = vor.u32 %v2545_v62, %v2290_v60  ;;  %v2274_v62 = vld [vmem:[#allocation3 + $0x220] sm:$0xf] }
 0x110   : > { %v530_v9 = vmul.f32 0.01, %v496_v4 }
 0x111   : > { %v561_v13 = vmax.f32 %v447_v3, %v529_v6  ;;  %1072 = vmatpush.bf16.msrb.mxu1 %v2291_v0 }
 0x112   : > { %v562_v15 = vmax.f32 %v496_v4, %v530_v9 }
 0x114   : > { %v448_v5 = vpop.f32.mrf.mxu0 }
 0x115   : > { %v449_v7 = vadd.f32 %v448_v5, %v2753_v59  ;;  %v497_v8 = vpop.f32.mrf.mxu1 }
 0x116   : > { %v498_v10 = vadd.f32 %v497_v8, %v2755_v61 }
 0x117   : > { %v531_v11 = vmul.f32 0.01, %v449_v7 }
 0x118   : > { %v532_v12 = vmul.f32 0.01, %v498_v10 }
 0x119   : > { %v563_v14 = vmax.f32 %v449_v7, %v531_v11 }
 0x11a   : > { %v564_v16 = vmax.f32 %v498_v10, %v532_v12 }
 0x11b   : > { %v613_v17 = vpack.c.bf16 %v563_v14, %v561_v13  ;;  %v2286_v13 = vld [vmem:[#allocation3 + $0x250] sm:$0xf]  ;;  %v2544_v14 = vld [vmem:[#allocation3 + $0x254] sm:$0xf0] }
 0x11c   : > { %v451_v18 = vpop.f32.mrf.mxu0  ;;  %v614_v19 = vpack.c.bf16 %v564_v16, %v562_v15  ;;  %v2287_v16 = vor.u32 %v2544_v14, %v2286_v13 }
 0x11d   : > { %v500_v20 = vpop.f32.mrf.mxu1  ;;  %752 = vmatmul.bf16.gmra.mxu2 %v613_v17  ;;  %v452_v21 = vadd.f32 %v451_v18, %v2753_v59 }
 0x11e   : > { %801 = vmatmul.bf16.gmra.mxu3 %v614_v19  ;;  %v501_v22 = vadd.f32 %v500_v20, %v2755_v61  ;;  %1073 = vmatpush.bf16.msrb.mxu1 %v2287_v16 }
 0x11f   : > { %v533_v24 = vmul.f32 0.01, %v452_v21 }
 0x120   : > { %v534_v27 = vmul.f32 0.01, %v501_v22 }
 0x121   : > { %v565_v34 = vmax.f32 %v452_v21, %v533_v24 }
 0x122   : > { %v566_v36 = vmax.f32 %v501_v22, %v534_v27 }
 0x124   : > { %v453_v23 = vpop.f32.mrf.mxu0 }
 0x125   : > { %v454_v25 = vadd.f32 %v453_v23, %v2753_v59  ;;  %v502_v26 = vpop.f32.mrf.mxu1  ;;  %v2792_v59 = vld [vmem:[%s2997_s2 + $0x1] ss:$0 sm:$0xff] }
 0x126   : > { %v503_v28 = vadd.f32 %v502_v26, %v2755_v61 }
 0x127   : > { %v535_v29 = vmul.f32 0.01, %v454_v25 }
 0x128   : > { %v536_v32 = vmul.f32 0.01, %v503_v28 }
 0x129   : > { %v567_v35 = vmax.f32 %v454_v25, %v535_v29  ;;  %v2282_v29 = vld [vmem:[#allocation3 + $0x240] sm:$0xf] }
 0x12a   : > { %v568_v37 = vmax.f32 %v503_v28, %v536_v32  ;;  %v2283_v32 = vor.u32 %v2543_v30, %v2282_v29  ;;  %v2266_v29 = vld [vmem:[#allocation3 + $0x200] sm:$0xf]  ;;  %v2539_v30 = vld [vmem:[#allocation3 + $0x204] sm:$0xf0] }
 0x12b   : > { %v615_v38 = vpack.c.bf16 %v567_v35, %v565_v34 }
 0x12c   : > { %v616_v39 = vpack.c.bf16 %v568_v37, %v566_v36  ;;  %1074 = vmatpush.bf16.msrb.mxu1 %v2283_v32 }
 0x12d   : > { %757 = vmatmul.bf16.gmra.mxu2 %v615_v38 }
 0x12e   : > { %806 = vmatmul.bf16.gmra.mxu3 %v616_v39 }
 0x140   : > { %v723_v61 = vpop.f32.mrf.mxu2 }
 0x141   : > { %v772_v40 = vpop.f32.mrf.mxu3  ;;  %v724_v41 = vadd.f32 %v723_v61, %v2792_v59 }
 0x143   : > { %v773_v42 = vadd.f32 %v772_v40, %v724_v41 }
 0x145   : > { %v812_v49 = vmul.f32 0.01, %v773_v42 }
 0x147   : > { %v828_v52 = vmax.f32 %v773_v42, %v812_v49 }
 0x148   : > { %v725_v45 = vpop.f32.mrf.mxu2 }
 0x149   : > { %v726_v47 = vadd.f32 %v725_v45, %v2792_v59  ;;  %v774_v48 = vpop.f32.mrf.mxu3  ;;  %v2542_v45 = vld [vmem:[#allocation3 + $0x234] sm:$0xf0] }
 0x14b   : > { %v775_v50 = vadd.f32 %v774_v48, %v726_v47  ;;  %v2279_v47 = vor.u32 %v2542_v45, %v2278_v44  ;;  %v2813_v45 = vld [vmem:[%s2997_s2 + $0x2] ss:$0 sm:$0xff] }
 0x14d   : > { %v813_v51 = vmul.f32 0.01, %v775_v50  ;;  %1075 = vmatpush.bf16.msrb.mxu1 %v2279_v47 }
 0x14f   : > { %v829_v53 = vmax.f32 %v775_v50, %v813_v51 }
 0x150   : > { %v728_v54 = vpop.f32.mrf.mxu2 }
 0x151   : > { %v777_v55 = vpop.f32.mrf.mxu3  ;;  %v860_v56 = vpack.c.bf16 %v829_v53, %v828_v52  ;;  %v729_v57 = vadd.f32 %v728_v54, %v2792_v59 }
 0x153   : > { %925 = vmatmul.bf16.vlgmr.msrb.gmra.mxu0 %v860_v56  ;;  %v778_v58 = vadd.f32 %v777_v55, %v729_v57 }
 0x155   : > { %v814_v3 = vmul.f32 0.01, %v778_v58 }
 0x157   : > { %v830_v6 = vmax.f32 %v778_v58, %v814_v3 }
 0x158   : > { %v730_v63 = vpop.f32.mrf.mxu2 }
 0x159   : > { %v731_v1 = vadd.f32 %v730_v63, %v2792_v59  ;;  %v779_v2 = vpop.f32.mrf.mxu3  ;;  %v2541_v63 = vld [vmem:[#allocation3 + $0x224] sm:$0xf0] }
 0x15b   : > { %v780_v4 = vadd.f32 %v779_v2, %v731_v1  ;;  %v2275_v1 = vor.u32 %v2541_v63, %v2274_v62 }
 0x15d   : > { %v815_v5 = vmul.f32 0.01, %v780_v4  ;;  %1076 = vmatpush.bf16.msrb.mxu1 %v2275_v1  ;;  %v2552_v1 = vld [vmem:[#allocation3 + $0x2d4] sm:$0xf0] }
 0x15f   : > { %v831_v7 = vmax.f32 %v780_v4, %v815_v5 }
 0x160   : > { %v733_v8 = vpop.f32.mrf.mxu2 }
 0x161   : > { %v782_v9 = vpop.f32.mrf.mxu3  ;;  %v861_v10 = vpack.c.bf16 %v831_v7, %v830_v6  ;;  %v734_v11 = vadd.f32 %v733_v8, %v2792_v59 }
 0x163   : > { %930 = vmatmul.bf16.gmra.mxu0 %v861_v10  ;;  %v783_v12 = vadd.f32 %v782_v9, %v734_v11  ;;  %v2270_v9 = vld [vmem:[#allocation3 + $0x210] sm:$0xf]  ;;  %v2540_v10 = vld [vmem:[#allocation3 + $0x214] sm:$0xf0] }
 0x165   : > { %v816_v19 = vmul.f32 0.01, %v783_v12 }
 0x167   : > { %v832_v22 = vmax.f32 %v783_v12, %v816_v19  ;;  %v2271_v12 = vor.u32 %v2540_v10, %v2270_v9 }
 0x168   : > { %v735_v15 = vpop.f32.mrf.mxu2 }
 0x169   : > { %v736_v17 = vadd.f32 %v735_v15, %v2792_v59  ;;  %v784_v18 = vpop.f32.mrf.mxu3  ;;  %1077 = vmatpush.bf16.msrb.mxu1 %v2271_v12 }
 0x16b   : > { %v785_v20 = vadd.f32 %v784_v18, %v736_v17 }
 0x16d   : > { %v817_v21 = vmul.f32 0.01, %v785_v20 }
 0x16f   : > { %v833_v23 = vmax.f32 %v785_v20, %v817_v21 }
 0x170   : > { %v738_v24 = vpop.f32.mrf.mxu2 }
 0x171   : > { %v787_v25 = vpop.f32.mrf.mxu3  ;;  %v862_v26 = vpack.c.bf16 %v833_v23, %v832_v22  ;;  %v739_v27 = vadd.f32 %v738_v24, %v2792_v59 }
 0x173   : > { %935 = vmatmul.bf16.gmra.mxu0 %v862_v26  ;;  %v788_v28 = vadd.f32 %v787_v25, %v739_v27 }
 0x175   : > { %v818_v35 = vmul.f32 0.01, %v788_v28 }
 0x177   : > { %v834_v38 = vmax.f32 %v788_v28, %v818_v35 }
 0x178   : > { %v740_v31 = vpop.f32.mrf.mxu2 }
 0x179   : > { %v741_v33 = vadd.f32 %v740_v31, %v2792_v59  ;;  %v789_v34 = vpop.f32.mrf.mxu3  ;;  %v2267_v31 = vor.u32 %v2539_v30, %v2266_v29 }
 0x17b   : > { %v790_v36 = vadd.f32 %v789_v34, %v741_v33  ;;  %1078 = vmatpush.bf16.msrb.mxu1 %v2267_v31 }
 0x17d   : > { %v819_v37 = vmul.f32 0.01, %v790_v36 }
 0x17f   : > { %v835_v39 = vmax.f32 %v790_v36, %v819_v37 }
 0x180   : > { %v743_v61 = vpop.f32.mrf.mxu2 }
 0x181   : > { %v792_v40 = vpop.f32.mrf.mxu3  ;;  %v863_v41 = vpack.c.bf16 %v835_v39, %v834_v38  ;;  %v744_v42 = vadd.f32 %v743_v61, %v2792_v59 }
 0x183   : > { %940 = vmatmul.bf16.gmra.mxu0 %v863_v41  ;;  %v793_v43 = vadd.f32 %v792_v40, %v744_v42  ;;  %v2326_v41 = vld [vmem:[#allocation3 + $0x2f0] sm:$0xf]  ;;  %v2554_v42 = vld [vmem:[#allocation3 + $0x2f4] sm:$0xf0] }
 0x185   : > { %v820_v50 = vmul.f32 0.01, %v793_v43 }
 0x187   : > { %v836_v53 = vmax.f32 %v793_v43, %v820_v50  ;;  %v2327_v43 = vor.u32 %v2554_v42, %v2326_v41  ;;  %v2322_v50 = vld [vmem:[#allocation3 + $0x2e0] sm:$0xf] }
 0x188   : > { %v745_v46 = vpop.f32.mrf.mxu2 }
 0x189   : > { %v746_v48 = vadd.f32 %v745_v46, %v2792_v59  ;;  %v794_v49 = vpop.f32.mrf.mxu3  ;;  %1225 = vmatpush.bf16.msrb.mxu2 %v2327_v43 }
 0x18b   : > { %v795_v51 = vadd.f32 %v794_v49, %v746_v48 }
 0x18d   : > { %v821_v52 = vmul.f32 0.01, %v795_v51 }
 0x18f   : > { %v837_v54 = vmax.f32 %v795_v51, %v821_v52  ;;  %v2553_v51 = vld [vmem:[#allocation3 + $0x2e4] sm:$0xf0] }
 0x190   : > { %v748_v55 = vpop.f32.mrf.mxu2  ;;  %v2323_v52 = vor.u32 %v2553_v51, %v2322_v50  ;;  %v2548_v50 = vld [vmem:[#allocation3 + $0x294] sm:$0xf0] }
 0x191   : > { %v797_v56 = vpop.f32.mrf.mxu3  ;;  %v864_v57 = vpack.c.bf16 %v837_v54, %v836_v53  ;;  %v749_v58 = vadd.f32 %v748_v55, %v2792_v59 }
 0x192   : > { %1226 = vmatpush.bf16.msrb.mxu2 %v2323_v52 }
 0x193   : > { %945 = vmatmul.bf16.gmra.mxu0 %v864_v57  ;;  %v798_v60 = vadd.f32 %v797_v56, %v749_v58 }
 0x195   : > { %v822_v4 = vmul.f32 0.01, %v798_v60 }
 0x197   : > { %v838_v7 = vmax.f32 %v798_v60, %v822_v4 }
 0x198   : > { %v750_v0 = vpop.f32.mrf.mxu2 }
 0x199   : > { %v751_v2 = vadd.f32 %v750_v0, %v2792_v59  ;;  %v799_v3 = vpop.f32.mrf.mxu3  ;;  %v2318_v0 = vld [vmem:[#allocation3 + $0x2d0] sm:$0xf] }
 0x19b   : > { %v800_v5 = vadd.f32 %v799_v3, %v751_v2  ;;  %v2319_v2 = vor.u32 %v2552_v1, %v2318_v0  ;;  %v2298_v1 = vld [vmem:[#allocation3 + $0x280] sm:$0xf] }
 0x19d   : > { %v823_v6 = vmul.f32 0.01, %v800_v5  ;;  %1227 = vmatpush.bf16.msrb.mxu2 %v2319_v2  ;;  %v2547_v2 = vld [vmem:[#allocation3 + $0x284] sm:$0xf0] }
 0x19f   : > { %v839_v8 = vmax.f32 %v800_v5, %v823_v6 }
 0x1a0   : > { %v753_v11 = vpop.f32.mrf.mxu2 }
 0x1a1   : > { %v802_v13 = vpop.f32.mrf.mxu3  ;;  %v865_v14 = vpack.c.bf16 %v839_v8, %v838_v7  ;;  %v754_v15 = vadd.f32 %v753_v11, %v2792_v59 }
 0x1a3   : > { %950 = vmatmul.bf16.gmra.mxu0 %v865_v14  ;;  %v803_v16 = vadd.f32 %v802_v13, %v754_v15  ;;  %v2314_v14 = vld [vmem:[#allocation3 + $0x2c0] sm:$0xf]  ;;  %v2551_v15 = vld [vmem:[#allocation3 + $0x2c4] sm:$0xf0] }
 0x1a5   : > { %v824_v20 = vmul.f32 0.01, %v803_v16 }
 0x1a7   : > { %v840_v23 = vmax.f32 %v803_v16, %v824_v20  ;;  %v2315_v16 = vor.u32 %v2551_v15, %v2314_v14  ;;  %v2358_v15 = vld [vmem:[#allocation3 + $0x370] sm:$0xf] }
 0x1a8   : > { %v755_v17 = vpop.f32.mrf.mxu2 }
 0x1a9   : > { %v756_v18 = vadd.f32 %v755_v17, %v2792_v59  ;;  %v804_v19 = vpop.f32.mrf.mxu3  ;;  %1228 = vmatpush.bf16.msrb.mxu2 %v2315_v16  ;;  %v2562_v16 = vld [vmem:[#allocation3 + $0x374] sm:$0xf0] }
 0x1ab   : > { %v805_v21 = vadd.f32 %v804_v19, %v756_v18 }
 0x1ad   : > { %v825_v22 = vmul.f32 0.01, %v805_v21 }
 0x1af   : > { %v841_v24 = vmax.f32 %v805_v21, %v825_v22 }
 0x1b0   : > { %v758_v25 = vpop.f32.mrf.mxu2 }
 0x1b1   : > { %v807_v26 = vpop.f32.mrf.mxu3  ;;  %v866_v27 = vpack.c.bf16 %v841_v24, %v840_v23  ;;  %v759_v28 = vadd.f32 %v758_v25, %v2792_v59 }
 0x1b3   : > { %955 = vmatmul.bf16.gmra.mxu0 %v866_v27  ;;  %v808_v32 = vadd.f32 %v807_v26, %v759_v28  ;;  %v2310_v26 = vld [vmem:[#allocation3 + $0x2b0] sm:$0xf]  ;;  %v2550_v27 = vld [vmem:[#allocation3 + $0x2b4] sm:$0xf0] }
 0x1b4   : > { %v2311_v28 = vor.u32 %v2550_v27, %v2310_v26  ;;  %v2354_v26 = vld [vmem:[#allocation3 + $0x360] sm:$0xf]  ;;  %v2561_v27 = vld [vmem:[#allocation3 + $0x364] sm:$0xf0] }
 0x1b5   : > { %v826_v36 = vmul.f32 0.01, %v808_v32 }
 0x1b6   : > { %1229 = vmatpush.bf16.msrb.mxu2 %v2311_v28  ;;  %v2355_v28 = vor.u32 %v2561_v27, %v2354_v26 }
 0x1b7   : > { %v842_v39 = vmax.f32 %v808_v32, %v826_v36 }
 0x1b8   : > { %v760_v33 = vpop.f32.mrf.mxu2 }
 0x1b9   : > { %v761_v34 = vadd.f32 %v760_v33, %v2792_v59  ;;  %v809_v35 = vpop.f32.mrf.mxu3 }
 0x1bb   : > { %v810_v37 = vadd.f32 %v809_v35, %v761_v34 }
 0x1bd   : > { %v827_v38 = vmul.f32 0.01, %v810_v37 }
 0x1bf   : > { %v843_v61 = vmax.f32 %v810_v37, %v827_v38  ;;  %v2306_v38 = vld [vmem:[#allocation3 + $0x2a0] sm:$0xf] }
 0x1c1   : > { %v867_v40 = vpack.c.bf16 %v843_v61, %v842_v39  ;;  %v2549_v39 = vld [vmem:[#allocation3 + $0x2a4] sm:$0xf0] }
 0x1c2   : > { %v2307_v61 = vor.u32 %v2549_v39, %v2306_v38  ;;  %v2350_v38 = vld [vmem:[#allocation3 + $0x350] sm:$0xf]  ;;  %v2560_v39 = vld [vmem:[#allocation3 + $0x354] sm:$0xf0] }
 0x1c3   : > { %960 = vmatmul.bf16.gmra.mxu0 %v867_v40 }
 0x1c4   : > { %1230 = vmatpush.bf16.msrb.mxu2 %v2307_v61  ;;  %v2351_v61 = vor.u32 %v2560_v39, %v2350_v38  ;;  %v2330_v38 = vld [vmem:[#allocation3 + $0x300] sm:$0xf]  ;;  %v2555_v39 = vld [vmem:[#allocation3 + $0x304] sm:$0xf0] }
 0x1d0   : > { %v926_v44 = vpop.f32.mrf.mxu0 }
 0x1d1   : > { %v927_v59 = vadd.f32 %v926_v44, %v2813_v45 }
 0x1d3   : > { %v966_v47 = vmul.f32 0.01, %v927_v59 }
 0x1d5   : > { %v982_v53 = vmax.f32 %v927_v59, %v966_v47 }
 0x1d8   : > { %v928_v46 = vpop.f32.mrf.mxu0 }
 0x1d9   : > { %v929_v48 = vadd.f32 %v928_v46, %v2813_v45 }
 0x1db   : > { %v967_v49 = vmul.f32 0.01, %v929_v48 }
 0x1dd   : > { %v983_v54 = vmax.f32 %v929_v48, %v967_v49  ;;  %v2302_v49 = vld [vmem:[#allocation3 + $0x290] sm:$0xf] }
 0x1de   : > { %v2303_v51 = vor.u32 %v2548_v50, %v2302_v49  ;;  %v2346_v49 = vld [vmem:[#allocation3 + $0x340] sm:$0xf]  ;;  %v2559_v50 = vld [vmem:[#allocation3 + $0x344] sm:$0xf0] }
 0x1df   : > { %v1014_v55 = vpack.c.bf16 %v983_v54, %v982_v53 }
 0x1e0   : > { %v931_v56 = vpop.f32.mrf.mxu0  ;;  %1231 = vmatpush.bf16.msrb.mxu2 %v2303_v51  ;;  %v2347_v51 = vor.u32 %v2559_v50, %v2346_v49  ;;  %v2421_v50 = vld [vmem:[#allocation3 + $0x3f8] sm:$0xf0] }
 0x1e1   : > { %1079 = vmatmul.bf16.vlgmr.msrb.gmra.mxu1 %v1014_v55  ;;  %v932_v57 = vadd.f32 %v931_v56, %v2813_v45 }
 0x1e3   : > { %v968_v60 = vmul.f32 0.01, %v932_v57 }
 0x1e5   : > { %v984_v3 = vmax.f32 %v932_v57, %v968_v60 }
 0x1e8   : > { %v933_v58 = vpop.f32.mrf.mxu0 }
 0x1e9   : > { %v934_v62 = vadd.f32 %v933_v58, %v2813_v45 }
 0x1eb   : > { %v969_v63 = vmul.f32 0.01, %v934_v62 }
 0x1ed   : > { %v985_v4 = vmax.f32 %v934_v62, %v969_v63 }
 0x1ef   : > { %v1015_v5 = vpack.c.bf16 %v985_v4, %v984_v3  ;;  %v2299_v3 = vor.u32 %v2547_v2, %v2298_v1 }
 0x1f0   : > { %v936_v6 = vpop.f32.mrf.mxu0 }
 0x1f1   : > { %1084 = vmatmul.bf16.gmra.mxu1 %v1015_v5  ;;  %v937_v7 = vadd.f32 %v936_v6, %v2813_v45  ;;  %1232 = vmatpush.bf16.msrb.mxu2 %v2299_v3 }
 0x1f3   : > { %v970_v9 = vmul.f32 0.01, %v937_v7 }
 0x1f5   : > { %v986_v12 = vmax.f32 %v937_v7, %v970_v9 }
 0x1f8   : > { %v938_v8 = vpop.f32.mrf.mxu0 }
 0x1f9   : > { %v939_v10 = vadd.f32 %v938_v8, %v2813_v45 }
 0x1fb   : > { %v971_v11 = vmul.f32 0.01, %v939_v10 }
 0x1fd   : > { %v987_v13 = vmax.f32 %v939_v10, %v971_v11 }
 0x1ff   : > { %v1016_v17 = vpack.c.bf16 %v987_v13, %v986_v12  ;;  %v2834_v13 = vld [vmem:[%s2997_s2 + $0x3] ss:$0 sm:$0xff] }
 0x200   : > { %v941_v18 = vpop.f32.mrf.mxu0 }
 0x201   : > { %1089 = vmatmul.bf16.gmra.mxu1 %v1016_v17  ;;  %v942_v19 = vadd.f32 %v941_v18, %v2813_v45  ;;  %v2359_v17 = vor.u32 %v2562_v16, %v2358_v15 }
 0x203   : > { %v972_v21 = vmul.f32 0.01, %v942_v19  ;;  %1379 = vmatpush.bf16.msrb.mxu3 %v2359_v17 }
 0x205   : > { %v988_v24 = vmax.f32 %v942_v19, %v972_v21 }
 0x207   : > { %1380 = vmatpush.bf16.msrb.mxu3 %v2355_v28 }
 0x208   : > { %v943_v20 = vpop.f32.mrf.mxu0 }
 0x209   : > { %v944_v22 = vadd.f32 %v943_v20, %v2813_v45 }
 0x20b   : > { %v973_v23 = vmul.f32 0.01, %v944_v22  ;;  %1381 = vmatpush.bf16.msrb.mxu3 %v2351_v61  ;;  %v2331_v61 = vor.u32 %v2555_v39, %v2330_v38 }
 0x20d   : > { %v989_v25 = vmax.f32 %v944_v22, %v973_v23 }
 0x20f   : > { %v1017_v29 = vpack.c.bf16 %v989_v25, %v988_v24  ;;  %1382 = vmatpush.bf16.msrb.mxu3 %v2347_v51 }
 0x210   : > { %v946_v30 = vpop.f32.mrf.mxu0 }
 0x211   : > { %1094 = vmatmul.bf16.gmra.mxu1 %v1017_v29  ;;  %v947_v31 = vadd.f32 %v946_v30, %v2813_v45 }
 0x213   : > { %v974_v33 = vmul.f32 0.01, %v947_v31 }
 0x215   : > { %v990_v36 = vmax.f32 %v947_v31, %v974_v33 }
 0x218   : > { %v948_v32 = vpop.f32.mrf.mxu0 }
 0x219   : > { %v949_v34 = vadd.f32 %v948_v32, %v2813_v45 }
 0x21b   : > { %v975_v35 = vmul.f32 0.01, %v949_v34 }
 0x21d   : > { %v991_v37 = vmax.f32 %v949_v34, %v975_v35 }
 0x21f   : > { %v1018_v40 = vpack.c.bf16 %v991_v37, %v990_v36 }
 0x220   : > { %v951_v41 = vpop.f32.mrf.mxu0 }
 0x221   : > { %1099 = vmatmul.bf16.gmra.mxu1 %v1018_v40  ;;  %v952_v42 = vadd.f32 %v951_v41, %v2813_v45 }
 0x223   : > { %v976_v44 = vmul.f32 0.01, %v952_v42 }
 0x225   : > { %v992_v47 = vmax.f32 %v952_v42, %v976_v44 }
 0x228   : > { %v953_v43 = vpop.f32.mrf.mxu0 }
 0x229   : > { %v954_v59 = vadd.f32 %v953_v43, %v2813_v45 }
 0x22b   : > { %v977_v46 = vmul.f32 0.01, %v954_v59 }
 0x22d   : > { %v993_v48 = vmax.f32 %v954_v59, %v977_v46 }
 0x22f   : > { %v1019_v52 = vpack.c.bf16 %v993_v48, %v992_v47 }
 0x230   : > { %v956_v53 = vpop.f32.mrf.mxu0 }
 0x231   : > { %1104 = vmatmul.bf16.gmra.mxu1 %v1019_v52  ;;  %v957_v54 = vadd.f32 %v956_v53, %v2813_v45 }
 0x233   : > { %v978_v56 = vmul.f32 0.01, %v957_v54 }
 0x235   : > { %v994_v60 = vmax.f32 %v957_v54, %v978_v56 }
 0x238   : > { %v958_v55 = vpop.f32.mrf.mxu0 }
 0x239   : > { %v959_v57 = vadd.f32 %v958_v55, %v2813_v45 }
 0x23b   : > { %v979_v58 = vmul.f32 0.01, %v959_v57 }
 0x23d   : > { %v995_v62 = vmax.f32 %v959_v57, %v979_v58 }
 0x23f   : > { %v1020_v63 = vpack.c.bf16 %v995_v62, %v994_v60 }
 0x240   : > { %v961_v0 = vpop.f32.mrf.mxu0 }
 0x241   : > { %1109 = vmatmul.bf16.gmra.mxu1 %v1020_v63  ;;  %v962_v4 = vadd.f32 %v961_v0, %v2813_v45  ;;  %v2342_v63 = vld [vmem:[#allocation3 + $0x330] sm:$0xf]  ;;  %v2558_v0 = vld [vmem:[#allocation3 + $0x334] sm:$0xf0] }
 0x242   : > { %v2343_v1 = vor.u32 %v2558_v0, %v2342_v63  ;;  %v2411_v63 = vld [vmem:[#allocation3 + $0x3e0] sm:$0xf]  ;;  %v2576_v0 = vld [vmem:[#allocation3 + $0x3e4] sm:$0xf0] }
 0x243   : > { %v980_v6 = vmul.f32 0.01, %v962_v4 }
 0x244   : > { %1383 = vmatpush.bf16.msrb.mxu3 %v2343_v1  ;;  %v2575_v1 = vld [vmem:[#allocation3 + $0x3e4] sm:$0xf] }
 0x245   : > { %v996_v9 = vmax.f32 %v962_v4, %v980_v6 }
 0x248   : > { %v963_v5 = vpop.f32.mrf.mxu0 }
 0x249   : > { %v964_v7 = vadd.f32 %v963_v5, %v2813_v45 }
 0x24b   : > { %v981_v8 = vmul.f32 0.01, %v964_v7 }
 0x24d   : > { %v997_v10 = vmax.f32 %v964_v7, %v981_v8 }
 0x24f   : > { %v1021_v11 = vpack.c.bf16 %v997_v10, %v996_v9 }
 0x251   : > { %1114 = vmatmul.bf16.gmra.mxu1 %v1021_v11  ;;  %v2338_v11 = vld [vmem:[#allocation3 + $0x320] sm:$0xf] }
 0x25e   : > { %v1080_v12 = vpop.f32.mrf.mxu1 }
 0x25f   : > { %v1081_v14 = vadd.f32 %v1080_v12, %v2834_v13  ;;  %v2557_v12 = vld [vmem:[#allocation3 + $0x324] sm:$0xf0] }
 0x261   : > { %v1120_v19 = vmul.f32 0.01, %v1081_v14 }
 0x263   : > { %v1136_v21 = vmax.f32 %v1081_v14, %v1120_v19  ;;  %v2339_v14 = vor.u32 %v2557_v12, %v2338_v11 }
 0x265   : > { %1384 = vmatpush.bf16.msrb.mxu3 %v2339_v14 }
 0x266   : > { %v1082_v18 = vpop.f32.mrf.mxu1 }
 0x267   : > { %v1083_v45 = vadd.f32 %v1082_v18, %v2834_v13 }
 0x269   : > { %v1121_v20 = vmul.f32 0.01, %v1083_v45 }
 0x26b   : > { %v1137_v22 = vmax.f32 %v1083_v45, %v1121_v20 }
 0x26d   : > { %v1168_v23 = vpack.c.bf16 %v1137_v22, %v1136_v21  ;;  %v2334_v22 = vld [vmem:[#allocation3 + $0x310] sm:$0xf] }
 0x26e   : > { %v1085_v24 = vpop.f32.mrf.mxu1 }
 0x26f   : > { %1233 = vmatmul.bf16.vlgmr.msrb.gmra.mxu2 %v1168_v23  ;;  %v1086_v25 = vadd.f32 %v1085_v24, %v2834_v13  ;;  %v2556_v23 = vld [vmem:[#allocation3 + $0x314] sm:$0xf0] }
 0x270   : > { %v2335_v24 = vor.u32 %v2556_v23, %v2334_v22 }
 0x271   : > { %v1122_v30 = vmul.f32 0.01, %v1086_v25 }
 0x272   : > { %1385 = vmatpush.bf16.msrb.mxu3 %v2335_v24 }
 0x273   : > { %v1138_v33 = vmax.f32 %v1086_v25, %v1122_v30 }
 0x276   : > { %v1087_v29 = vpop.f32.mrf.mxu1  ;;  %1386 = vmatpush.bf16.msrb.mxu3 %v2331_v61 }
 0x277   : > { %v1088_v31 = vadd.f32 %v1087_v29, %v2834_v13 }
 0x279   : > { %v1123_v32 = vmul.f32 0.01, %v1088_v31 }
 0x27b   : > { %v1139_v34 = vmax.f32 %v1088_v31, %v1123_v32 }
 0x27d   : > { %v1169_v35 = vpack.c.bf16 %v1139_v34, %v1138_v33 }
 0x27e   : > { %v1090_v36 = vpop.f32.mrf.mxu1 }
 0x27f   : > { %1238 = vmatmul.bf16.gmra.mxu2 %v1169_v35  ;;  %v1091_v37 = vadd.f32 %v1090_v36, %v2834_v13 }
 0x281   : > { %v1124_v41 = vmul.f32 0.01, %v1091_v37 }
 0x283   : > { %v1140_v44 = vmax.f32 %v1091_v37, %v1124_v41 }
 0x286   : > { %v1092_v40 = vpop.f32.mrf.mxu1 }
 0x287   : > { %v1093_v42 = vadd.f32 %v1092_v40, %v2834_v13 }
 0x289   : > { %v1125_v43 = vmul.f32 0.01, %v1093_v42 }
 0x28b   : > { %v1141_v59 = vmax.f32 %v1093_v42, %v1125_v43 }
 0x28d   : > { %v1170_v46 = vpack.c.bf16 %v1141_v59, %v1140_v44  ;;  %v2855_v59 = vld [vmem:[%s2997_s2 + $0x4] ss:$0 sm:$0xff] }
 0x28e   : > { %v1095_v47 = vpop.f32.mrf.mxu1 }
 0x28f   : > { %1243 = vmatmul.bf16.gmra.mxu2 %v1170_v46  ;;  %v1096_v48 = vadd.f32 %v1095_v47, %v2834_v13  ;;  %v2419_v47 = vld [vmem:[#allocation3 + $0x3f0] sm:$0xf] }
 0x291   : > { %v1126_v53 = vmul.f32 0.01, %v1096_v48 }
 0x293   : > { %v1142_v56 = vmax.f32 %v1096_v48, %v1126_v53  ;;  %v2578_v48 = vld [vmem:[#allocation3 + $0x3f4] sm:$0xf0] }
 0x294   : > { %v2420_v49 = vor.u32 %v2578_v48, %v2419_v47  ;;  %v2389_v48 = vld [vmem:[#allocation3 + $0x3b8] sm:$0xf0] }
 0x296   : > { %v1097_v52 = vpop.f32.mrf.mxu1  ;;  %1571 = vmatpush.bf16.msra.mxu0 %v2420_v49 }
 0x297   : > { %v1098_v54 = vadd.f32 %v1097_v52, %v2834_v13 }
 0x299   : > { %v1127_v55 = vmul.f32 0.01, %v1098_v54 }
 0x29b   : > { %v1143_v57 = vmax.f32 %v1098_v54, %v1127_v55 }
 0x29d   : > { %v1171_v58 = vpack.c.bf16 %v1143_v57, %v1142_v56 }
 0x29e   : > { %v1100_v60 = vpop.f32.mrf.mxu1 }
 0x29f   : > { %1248 = vmatmul.bf16.gmra.mxu2 %v1171_v58  ;;  %v1101_v62 = vadd.f32 %v1100_v60, %v2834_v13 }
 0x2a1   : > { %v1128_v3 = vmul.f32 0.01, %v1101_v62 }
 0x2a3   : > { %v1144_v6 = vmax.f32 %v1101_v62, %v1128_v3  ;;  %v2413_v3 = vld [vmem:[#allocation3 + $0x3e8] sm:$0xf0] }
 0x2a6   : > { %v1102_v2 = vpop.f32.mrf.mxu1 }
 0x2a7   : > { %v1103_v4 = vadd.f32 %v1102_v2, %v2834_v13  ;;  %v2412_v2 = vor.u32 %v2576_v0, %v2411_v63  ;;  %v2381_v0 = vld [vmem:[#allocation3 + $0x3a8] sm:$0xf0] }
 0x2a9   : > { %v1129_v5 = vmul.f32 0.01, %v1103_v4  ;;  %1572 = vmatpush.bf16.msra.mxu0 %v2412_v2 }
 0x2ab   : > { %v1145_v7 = vmax.f32 %v1103_v4, %v1129_v5  ;;  %v2416_v4 = vor.u32 %v2575_v1, %v2413_v3 }
 0x2ad   : > { %v1172_v8 = vpack.c.bf16 %v1145_v7, %v1144_v6 }
 0x2ae   : > { %v1105_v9 = vpop.f32.mrf.mxu1 }
 0x2af   : > { %1253 = vmatmul.bf16.gmra.mxu2 %v1172_v8  ;;  %v1106_v10 = vadd.f32 %v1105_v9, %v2834_v13 }
 0x2b1   : > { %v1130_v16 = vmul.f32 0.01, %v1106_v10 }
 0x2b3   : > { %v1146_v19 = vmax.f32 %v1106_v10, %v1130_v16  ;;  %v2574_v16 = vld [vmem:[#allocation3 + $0x3d4] sm:$0xf0] }
 0x2b6   : > { %v1107_v15 = vpop.f32.mrf.mxu1 }
 0x2b7   : > { %v1108_v17 = vadd.f32 %v1107_v15, %v2834_v13  ;;  %v2403_v15 = vld [vmem:[#allocation3 + $0x3d0] sm:$0xf] }
 0x2b9   : > { %v1131_v18 = vmul.f32 0.01, %v1108_v17 }
 0x2bb   : > { %v1147_v45 = vmax.f32 %v1108_v17, %v1131_v18  ;;  %v2573_v17 = vld [vmem:[#allocation3 + $0x3d4] sm:$0xf]  ;;  %v2404_v18 = vor.u32 %v2574_v16, %v2403_v15  ;;  %v2373_v15 = vld [vmem:[#allocation3 + $0x398] sm:$0xf0] }
 0x2bd   : > { %v1173_v20 = vpack.c.bf16 %v1147_v45, %v1146_v19  ;;  %v2405_v19 = vld [vmem:[#allocation3 + $0x3d8] sm:$0xf0]  ;;  %1573 = vmatpush.bf16.msra.mxu0 %v2404_v18 }
 0x2be   : > { %v1110_v21 = vpop.f32.mrf.mxu1  ;;  %v2408_v45 = vor.u32 %v2573_v17, %v2405_v19 }
 0x2bf   : > { %1258 = vmatmul.bf16.gmra.mxu2 %v1173_v20  ;;  %v1111_v25 = vadd.f32 %v1110_v21, %v2834_v13 }
 0x2c1   : > { %v1132_v27 = vmul.f32 0.01, %v1111_v25 }
 0x2c3   : > { %v1148_v30 = vmax.f32 %v1111_v25, %v1132_v27 }
 0x2c6   : > { %v1112_v26 = vpop.f32.mrf.mxu1 }
 0x2c7   : > { %v1113_v28 = vadd.f32 %v1112_v26, %v2834_v13 }
 0x2c9   : > { %v1133_v29 = vmul.f32 0.01, %v1113_v28 }
 0x2cb   : > { %v1149_v31 = vmax.f32 %v1113_v28, %v1133_v29  ;;  %v2395_v29 = vld [vmem:[#allocation3 + $0x3c0] sm:$0xf] }
 0x2cd   : > { %v1174_v32 = vpack.c.bf16 %v1149_v31, %v1148_v30  ;;  %v2572_v30 = vld [vmem:[#allocation3 + $0x3c4] sm:$0xf0]  ;;  %v2571_v31 = vld [vmem:[#allocation3 + $0x3c4] sm:$0xf] }
 0x2ce   : > { %v1115_v33 = vpop.f32.mrf.mxu1 }
 0x2cf   : > { %1263 = vmatmul.bf16.gmra.mxu2 %v1174_v32  ;;  %v1116_v34 = vadd.f32 %v1115_v33, %v2834_v13  ;;  %v2396_v32 = vor.u32 %v2572_v30, %v2395_v29  ;;  %v2397_v33 = vld [vmem:[#allocation3 + $0x3c8] sm:$0xf0]  ;;  %v2363_v29 = vld [vmem:[#allocation3 + $0x380] sm:$0xf]  ;;  %v2564_v30 = vld [vmem:[#allocation3 + $0x384] sm:$0xf0] }
 0x2d1   : > { %v1134_v36 = vmul.f32 0.01, %v1116_v34  ;;  %1574 = vmatpush.bf16.msra.mxu0 %v2396_v32  ;;  %v2364_v32 = vor.u32 %v2564_v30, %v2363_v29 }
 0x2d3   : > { %v1150_v41 = vmax.f32 %v1116_v34, %v1134_v36  ;;  %v2400_v34 = vor.u32 %v2571_v31, %v2397_v33  ;;  %v2563_v31 = vld [vmem:[#allocation3 + $0x384] sm:$0xf]  ;;  %v2365_v33 = vld [vmem:[#allocation3 + $0x388] sm:$0xf0] }
 0x2d6   : > { %v1117_v35 = vpop.f32.mrf.mxu1 }
 0x2d7   : > { %v1118_v37 = vadd.f32 %v1117_v35, %v2834_v13  ;;  %v2577_v13 = vld [vmem:[#allocation3 + $0x3f4] sm:$0xf] }
 0x2d8   : > { %v2424_v51 = vor.u32 %v2577_v13, %v2421_v50 }
 0x2d9   : > { %v1135_v40 = vmul.f32 0.01, %v1118_v37 }
 0x2da   : > { %1620 = vmatpush.bf16.msra.mxu1 %v2424_v51 }
 0x2db   : > { %v1151_v42 = vmax.f32 %v1118_v37, %v1135_v40 }
 0x2dd   : > { %v1175_v43 = vpack.c.bf16 %v1151_v42, %v1150_v41 }
 0x2de   : > { %1621 = vmatpush.bf16.msra.mxu1 %v2416_v4 }
 0x2df   : > { %1268 = vmatmul.bf16.gmra.mxu2 %v1175_v43  ;;  %v2387_v43 = vld [vmem:[#allocation3 + $0x3b0] sm:$0xf] }
 0x2e2   : > { %1622 = vmatpush.bf16.msra.mxu1 %v2408_v45 }
 0x2e6   : > { %1623 = vmatpush.bf16.msra.mxu1 %v2400_v34 }
 0x2f2   : > { %v1234_v44 = vpop.f32.mrf.mxu2 }
 0x2f3   : > { %v1235_v46 = vadd.f32 %v1234_v44, %v2855_v59  ;;  %v2570_v44 = vld [vmem:[#allocation3 + $0x3b4] sm:$0xf0] }
 0x2f4   : > { %v2388_v47 = vor.u32 %v2570_v44, %v2387_v43  ;;  %v2487_v43 = vld [vmem:[#allocation3 + $0x4f0] sm:$0xf]  ;;  %v2594_v44 = vld [vmem:[#allocation3 + $0x4f4] sm:$0xf0] }
 0x2f5   : > { %v1274_v53 = vmul.f32 0.01, %v1235_v46 }
 0x2f6   : > { %1575 = vmatpush.bf16.msra.mxu0 %v2388_v47 }
 0x2f7   : > { %v1290_v56 = vmax.f32 %v1235_v46, %v1274_v53  ;;  %v2569_v46 = vld [vmem:[#allocation3 + $0x3b4] sm:$0xf] }
 0x2f8   : > { %v2392_v13 = vor.u32 %v2569_v46, %v2389_v48  ;;  %v2488_v46 = vor.u32 %v2594_v44, %v2487_v43 }
 0x2fa   : > { %v1236_v52 = vpop.f32.mrf.mxu2  ;;  %1624 = vmatpush.bf16.msra.mxu1 %v2392_v13  ;;  %1927 = vmatpush.bf16.msra.mxu3 %v2488_v46 }
 0x2fb   : > { %v1237_v54 = vadd.f32 %v1236_v52, %v2855_v59 }
 0x2fd   : > { %v1275_v55 = vmul.f32 0.01, %v1237_v54 }
 0x2ff   : > { %v1291_v57 = vmax.f32 %v1237_v54, %v1275_v55 }
 0x301   : > { %v1322_v58 = vpack.c.bf16 %v1291_v57, %v1290_v56 }
 0x302   : > { %v1239_v60 = vpop.f32.mrf.mxu2 }
 0x303   : > { %1387 = vmatmul.bf16.vlgmr.msrb.gmra.mxu3 %v1322_v58  ;;  %v1240_v62 = vadd.f32 %v1239_v60, %v2855_v59  ;;  %v2379_v58 = vld [vmem:[#allocation3 + $0x3a0] sm:$0xf]  ;;  %v2568_v60 = vld [vmem:[#allocation3 + $0x3a4] sm:$0xf0] }
 0x304   : > { %v2380_v63 = vor.u32 %v2568_v60, %v2379_v58  ;;  %v2483_v58 = vld [vmem:[#allocation3 + $0x4e0] sm:$0xf]  ;;  %v2593_v60 = vld [vmem:[#allocation3 + $0x4e4] sm:$0xf0] }
 0x305   : > { %v1276_v6 = vmul.f32 0.01, %v1240_v62 }
 0x306   : > { %1576 = vmatpush.bf16.msra.mxu0 %v2380_v63 }
 0x307   : > { %v1292_v9 = vmax.f32 %v1240_v62, %v1276_v6  ;;  %v2567_v62 = vld [vmem:[#allocation3 + $0x3a4] sm:$0xf] }
 0x308   : > { %v2384_v1 = vor.u32 %v2567_v62, %v2381_v0  ;;  %v2484_v62 = vor.u32 %v2593_v60, %v2483_v58 }
 0x30a   : > { %v1241_v5 = vpop.f32.mrf.mxu2  ;;  %1625 = vmatpush.bf16.msra.mxu1 %v2384_v1  ;;  %1928 = vmatpush.bf16.msra.mxu3 %v2484_v62 }
 0x30b   : > { %v1242_v7 = vadd.f32 %v1241_v5, %v2855_v59 }
 0x30d   : > { %v1277_v8 = vmul.f32 0.01, %v1242_v7 }
 0x30f   : > { %v1293_v10 = vmax.f32 %v1242_v7, %v1277_v8 }
 0x311   : > { %v1323_v11 = vpack.c.bf16 %v1293_v10, %v1292_v9  ;;  %v2371_v10 = vld [vmem:[#allocation3 + $0x390] sm:$0xf] }
 0x312   : > { %v1244_v12 = vpop.f32.mrf.mxu2 }
 0x313   : > { %1392 = vmatmul.bf16.gmra.mxu3 %v1323_v11  ;;  %v1245_v14 = vadd.f32 %v1244_v12, %v2855_v59  ;;  %v2566_v11 = vld [vmem:[#allocation3 + $0x394] sm:$0xf0]  ;;  %v2565_v12 = vld [vmem:[#allocation3 + $0x394] sm:$0xf] }
 0x314   : > { %v2376_v16 = vor.u32 %v2565_v12, %v2373_v15  ;;  %v2592_v12 = vld [vmem:[#allocation3 + $0x4d4] sm:$0xf0] }
 0x315   : > { %v1278_v21 = vmul.f32 0.01, %v1245_v14 }
 0x316   : > { %1626 = vmatpush.bf16.msra.mxu1 %v2376_v16 }
 0x317   : > { %v1294_v24 = vmax.f32 %v1245_v14, %v1278_v21  ;;  %v2372_v14 = vor.u32 %v2566_v11, %v2371_v10  ;;  %v2479_v11 = vld [vmem:[#allocation3 + $0x4d0] sm:$0xf] }
 0x319   : > { %1577 = vmatpush.bf16.msra.mxu0 %v2372_v14  ;;  %v2480_v14 = vor.u32 %v2592_v12, %v2479_v11 }
 0x31a   : > { %v1246_v20 = vpop.f32.mrf.mxu2 }
 0x31b   : > { %v1247_v22 = vadd.f32 %v1246_v20, %v2855_v59  ;;  %1929 = vmatpush.bf16.msra.mxu3 %v2480_v14 }
 0x31d   : > { %v1279_v23 = vmul.f32 0.01, %v1247_v22  ;;  %1578 = vmatpush.bf16.msra.mxu0 %v2364_v32 }
 0x31f   : > { %v1295_v25 = vmax.f32 %v1247_v22, %v1279_v23 }
 0x321   : > { %v1324_v26 = vpack.c.bf16 %v1295_v25, %v1294_v24 }
 0x322   : > { %v1249_v27 = vpop.f32.mrf.mxu2 }
 0x323   : > { %1397 = vmatmul.bf16.gmra.mxu3 %v1324_v26  ;;  %v1250_v28 = vadd.f32 %v1249_v27, %v2855_v59 }
 0x325   : > { %v1280_v36 = vmul.f32 0.01, %v1250_v28 }
 0x327   : > { %v1296_v39 = vmax.f32 %v1250_v28, %v1280_v36 }
 0x32a   : > { %v1251_v35 = vpop.f32.mrf.mxu2 }
 0x32b   : > { %v1252_v37 = vadd.f32 %v1251_v35, %v2855_v59  ;;  %v2368_v35 = vor.u32 %v2563_v31, %v2365_v33 }
 0x32d   : > { %v1281_v38 = vmul.f32 0.01, %v1252_v37  ;;  %1627 = vmatpush.bf16.msra.mxu1 %v2368_v35  ;;  %v2439_v35 = vld [vmem:[#allocation3 + $0x430] sm:$0xf] }
 0x32f   : > { %v1297_v61 = vmax.f32 %v1252_v37, %v1281_v38 }
 0x331   : > { %v1325_v40 = vpack.c.bf16 %v1297_v61, %v1296_v39  ;;  %v2455_v39 = vld [vmem:[#allocation3 + $0x470] sm:$0xf]  ;;  %v2586_v61 = vld [vmem:[#allocation3 + $0x474] sm:$0xf0] }
 0x332   : > { %v1254_v41 = vpop.f32.mrf.mxu2 }
 0x333   : > { %1402 = vmatmul.bf16.gmra.mxu3 %v1325_v40  ;;  %v1255_v42 = vadd.f32 %v1254_v41, %v2855_v59  ;;  %v2456_v40 = vor.u32 %v2586_v61, %v2455_v39 }
 0x335   : > { %v1282_v50 = vmul.f32 0.01, %v1255_v42  ;;  %1878 = vmatpush.bf16.msra.mxu2 %v2456_v40  ;;  %v2471_v40 = vld [vmem:[#allocation3 + $0x4b0] sm:$0xf] }
 0x337   : > { %v1298_v53 = vmax.f32 %v1255_v42, %v1282_v50 }
 0x33a   : > { %v1256_v49 = vpop.f32.mrf.mxu2 }
 0x33b   : > { %v1257_v51 = vadd.f32 %v1256_v49, %v2855_v59 }
 0x33d   : > { %v1283_v52 = vmul.f32 0.01, %v1257_v51 }
 0x33f   : > { %v1299_v54 = vmax.f32 %v1257_v51, %v1283_v52  ;;  %v2451_v52 = vld [vmem:[#allocation3 + $0x460] sm:$0xf] }
 0x341   : > { %v1326_v55 = vpack.c.bf16 %v1299_v54, %v1298_v53  ;;  %v2585_v53 = vld [vmem:[#allocation3 + $0x464] sm:$0xf0] }
 0x342   : > { %v1259_v56 = vpop.f32.mrf.mxu2  ;;  %v2452_v54 = vor.u32 %v2585_v53, %v2451_v52 }
 0x343   : > { %1407 = vmatmul.bf16.gmra.mxu3 %v1326_v55  ;;  %v1260_v57 = vadd.f32 %v1259_v56, %v2855_v59 }
 0x344   : > { %1879 = vmatpush.bf16.msra.mxu2 %v2452_v54 }
 0x345   : > { %v1284_v3 = vmul.f32 0.01, %v1260_v57 }
 0x347   : > { %v1300_v6 = vmax.f32 %v1260_v57, %v1284_v3 }
 0x34a   : > { %v1261_v2 = vpop.f32.mrf.mxu2 }
 0x34b   : > { %v1262_v4 = vadd.f32 %v1261_v2, %v2855_v59 }
 0x34d   : > { %v1285_v5 = vmul.f32 0.01, %v1262_v4 }
 0x34f   : > { %v1301_v7 = vmax.f32 %v1262_v4, %v1285_v5  ;;  %v2447_v5 = vld [vmem:[#allocation3 + $0x450] sm:$0xf] }
 0x351   : > { %v1327_v8 = vpack.c.bf16 %v1301_v7, %v1300_v6  ;;  %v2584_v6 = vld [vmem:[#allocation3 + $0x454] sm:$0xf0] }
 0x352   : > { %v1264_v9 = vpop.f32.mrf.mxu2  ;;  %v2448_v7 = vor.u32 %v2584_v6, %v2447_v5 }
 0x353   : > { %1412 = vmatmul.bf16.gmra.mxu3 %v1327_v8  ;;  %v1265_v17 = vadd.f32 %v1264_v9, %v2855_v59 }
 0x354   : > { %1880 = vmatpush.bf16.msra.mxu2 %v2448_v7  ;;  %v2463_v7 = vld [vmem:[#allocation3 + $0x490] sm:$0xf] }
 0x355   : > { %v1286_v19 = vmul.f32 0.01, %v1265_v17 }
 0x357   : > { %v1302_v21 = vmax.f32 %v1265_v17, %v1286_v19 }
 0x35a   : > { %v1266_v18 = vpop.f32.mrf.mxu2 }
 0x35b   : > { %v1267_v45 = vadd.f32 %v1266_v18, %v2855_v59 }
 0x35d   : > { %v1287_v20 = vmul.f32 0.01, %v1267_v45 }
 0x35f   : > { %v1303_v22 = vmax.f32 %v1267_v45, %v1287_v20  ;;  %v2443_v20 = vld [vmem:[#allocation3 + $0x440] sm:$0xf] }
 0x361   : > { %v1328_v23 = vpack.c.bf16 %v1303_v22, %v1302_v21  ;;  %v2583_v21 = vld [vmem:[#allocation3 + $0x444] sm:$0xf0] }
 0x362   : > { %v1269_v24 = vpop.f32.mrf.mxu2  ;;  %v2444_v22 = vor.u32 %v2583_v21, %v2443_v20  ;;  %v2579_v20 = vld [vmem:[#allocation3 + $0x404] sm:$0xf0] }
 0x363   : > { %1417 = vmatmul.bf16.gmra.mxu3 %v1328_v23  ;;  %v1270_v25 = vadd.f32 %v1269_v24, %v2855_v59 }
 0x364   : > { %1881 = vmatpush.bf16.msra.mxu2 %v2444_v22  ;;  %v2459_v22 = vld [vmem:[#allocation3 + $0x480] sm:$0xf] }
 0x365   : > { %v1288_v26 = vmul.f32 0.01, %v1270_v25 }
 0x367   : > { %v1304_v36 = vmax.f32 %v1270_v25, %v1288_v26  ;;  %v2475_v26 = vld [vmem:[#allocation3 + $0x4c0] sm:$0xf] }
 0x36a   : > { %v1271_v27 = vpop.f32.mrf.mxu2 }
 0x36b   : > { %v1272_v28 = vadd.f32 %v1271_v27, %v2855_v59  ;;  %v2876_v59 = vld [vmem:[%s2997_s2 + $0x5] ss:$0 sm:$0xff]  ;;  %v2591_v27 = vld [vmem:[#allocation3 + $0x4c4] sm:$0xf0] }
 0x36d   : > { %v1289_v34 = vmul.f32 0.01, %v1272_v28 }
 0x36f   : > { %v1305_v37 = vmax.f32 %v1272_v28, %v1289_v34  ;;  %v2476_v28 = vor.u32 %v2591_v27, %v2475_v26 }
 0x371   : > { %v1329_v38 = vpack.c.bf16 %v1305_v37, %v1304_v36  ;;  %1930 = vmatpush.bf16.msra.mxu3 %v2476_v28  ;;  %v2582_v36 = vld [vmem:[#allocation3 + $0x434] sm:$0xf0] }
 0x372   : > { %v2440_v37 = vor.u32 %v2582_v36, %v2439_v35 }
 0x373   : > { %1422 = vmatmul.bf16.gmra.mxu3 %v1329_v38 }
 0x374   : > { %1882 = vmatpush.bf16.msra.mxu2 %v2440_v37 }
 0x386   : > { %v1388_v41 = vpop.f32.mrf.mxu3 }
 0x387   : > { %v1389_v42 = vadd.f32 %v1388_v41, %v2876_v59  ;;  %v2590_v41 = vld [vmem:[#allocation3 + $0x4b4] sm:$0xf0] }
 0x389   : > { %v1428_v48 = vmul.f32 0.01, %v1389_v42 }
 0x38b   : > { %v1444_v50 = vmax.f32 %v1389_v42, %v1428_v48  ;;  %v2472_v42 = vor.u32 %v2590_v41, %v2471_v40 }
 0x38d   : > { %1931 = vmatpush.bf16.msra.mxu3 %v2472_v42 }
 0x38e   : > { %v1390_v47 = vpop.f32.mrf.mxu3 }
 0x38f   : > { %v1391_v13 = vadd.f32 %v1390_v47, %v2876_v59 }
 0x391   : > { %v1429_v49 = vmul.f32 0.01, %v1391_v13 }
 0x393   : > { %v1445_v51 = vmax.f32 %v1391_v13, %v1429_v49  ;;  %v2435_v49 = vld [vmem:[#allocation3 + $0x420] sm:$0xf] }
 0x395   : > { %v1476_v55 = vpack.c.bf16 %v1445_v51, %v1444_v50  ;;  %v2581_v50 = vld [vmem:[#allocation3 + $0x424] sm:$0xf0] }
 0x396   : > { %v1393_v56 = vpop.f32.mrf.mxu3  ;;  %v2436_v51 = vor.u32 %v2581_v50, %v2435_v49 }
 0x397   : > { %1579 = vmatmul.bf16.vlgmr.msra.gmra.mxu0 %v1476_v55  ;;  %1628 = vmatmul.bf16.vlgmr.msra.gmra.mxu1 %v1476_v55  ;;  %v1394_v57 = vadd.f32 %v1393_v56, %v2876_v59  ;;  %v2467_v55 = vld [vmem:[#allocation3 + $0x4a0] sm:$0xf]  ;;  %v2589_v56 = vld [vmem:[#allocation3 + $0x4a4] sm:$0xf0] }
 0x398   : > { %1883 = vmatpush.bf16.msra.mxu2 %v2436_v51 }
 0x399   : > { %v1430_v0 = vmul.f32 0.01, %v1394_v57 }
 0x39b   : > { %v1446_v3 = vmax.f32 %v1394_v57, %v1430_v0  ;;  %v2468_v57 = vor.u32 %v2589_v56, %v2467_v55 }
 0x39d   : > { %1932 = vmatpush.bf16.msra.mxu3 %v2468_v57 }
 0x39e   : > { %v1395_v63 = vpop.f32.mrf.mxu3 }
 0x39f   : > { %v1396_v1 = vadd.f32 %v1395_v63, %v2876_v59 }
 0x3a1   : > { %v1431_v2 = vmul.f32 0.01, %v1396_v1 }
 0x3a3   : > { %v1447_v4 = vmax.f32 %v1396_v1, %v1431_v2  ;;  %v2431_v2 = vld [vmem:[#allocation3 + $0x410] sm:$0xf] }
 0x3a5   : > { %v1477_v8 = vpack.c.bf16 %v1447_v4, %v1446_v3  ;;  %v2580_v3 = vld [vmem:[#allocation3 + $0x414] sm:$0xf0] }
 0x3a6   : > { %v1398_v9 = vpop.f32.mrf.mxu3  ;;  %v2432_v4 = vor.u32 %v2580_v3, %v2431_v2 }
 0x3a7   : > { %1584 = vmatmul.bf16.gmra.mxu0 %v1477_v8  ;;  %1633 = vmatmul.bf16.gmra.mxu1 %v1477_v8  ;;  %v1399_v10 = vadd.f32 %v1398_v9, %v2876_v59  ;;  %v2588_v8 = vld [vmem:[#allocation3 + $0x494] sm:$0xf0] }
 0x3a8   : > { %1884 = vmatpush.bf16.msra.mxu2 %v2432_v4  ;;  %v2464_v9 = vor.u32 %v2588_v8, %v2463_v7 }
 0x3a9   : > { %v1432_v16 = vmul.f32 0.01, %v1399_v10 }
 0x3aa   : > { %1933 = vmatpush.bf16.msra.mxu3 %v2464_v9 }
 0x3ab   : > { %v1448_v19 = vmax.f32 %v1399_v10, %v1432_v16 }
 0x3ae   : > { %v1400_v15 = vpop.f32.mrf.mxu3 }
 0x3af   : > { %v1401_v17 = vadd.f32 %v1400_v15, %v2876_v59 }
 0x3b1   : > { %v1433_v18 = vmul.f32 0.01, %v1401_v17 }
 0x3b3   : > { %v1449_v45 = vmax.f32 %v1401_v17, %v1433_v18 }
 0x3b5   : > { %v1478_v23 = vpack.c.bf16 %v1449_v45, %v1448_v19  ;;  %v2427_v45 = vld [vmem:[#allocation3 + $0x400] sm:$0xf] }
 0x3b6   : > { %v1403_v24 = vpop.f32.mrf.mxu3  ;;  %v2428_v21 = vor.u32 %v2579_v20, %v2427_v45 }
 0x3b7   : > { %1589 = vmatmul.bf16.gmra.mxu0 %v1478_v23  ;;  %1638 = vmatmul.bf16.gmra.mxu1 %v1478_v23  ;;  %v1404_v25 = vadd.f32 %v1403_v24, %v2876_v59  ;;  %v2587_v23 = vld [vmem:[#allocation3 + $0x484] sm:$0xf0] }
 0x3b8   : > { %1885 = vmatpush.bf16.msra.mxu2 %v2428_v21 }
 0x3b9   : > { %v1434_v30 = vmul.f32 0.01, %v1404_v25 }
 0x3bb   : > { %v1450_v33 = vmax.f32 %v1404_v25, %v1434_v30  ;;  %v2460_v25 = vor.u32 %v2587_v23, %v2459_v22 }
 0x3bd   : > { %1934 = vmatpush.bf16.msra.mxu3 %v2460_v25 }
 0x3be   : > { %v1405_v29 = vpop.f32.mrf.mxu3 }
 0x3bf   : > { %v1406_v31 = vadd.f32 %v1405_v29, %v2876_v59 }
 0x3c1   : > { %v1435_v32 = vmul.f32 0.01, %v1406_v31 }
 0x3c3   : > { %v1451_v34 = vmax.f32 %v1406_v31, %v1435_v32 }
 0x3c5   : > { %v1479_v38 = vpack.c.bf16 %v1451_v34, %v1450_v33  ;;  %v2360_v33 = vld [vmem:[%s2997_s2 + $0x6] ss:$8 sm:$0x3] }
 0x3c6   : > { %v1408_v39 = vpop.f32.mrf.mxu3  ;;  %v2897_v36 = vperm.slane %v2360_v33, 0  ;;  %v2899_v37 = vperm.slane %v2360_v33, 1 }
 0x3c7   : > { %1594 = vmatmul.bf16.gmra.mxu0 %v1479_v38  ;;  %1643 = vmatmul.bf16.gmra.mxu1 %v1479_v38  ;;  %v1409_v61 = vadd.f32 %v1408_v39, %v2876_v59 }
 0x3c9   : > { %v1436_v44 = vmul.f32 0.01, %v1409_v61 }
 0x3cb   : > { %v1452_v48 = vmax.f32 %v1409_v61, %v1436_v44 }
 0x3ce   : > { %v1410_v43 = vpop.f32.mrf.mxu3 }
 0x3cf   : > { %v1411_v46 = vadd.f32 %v1410_v43, %v2876_v59 }
 0x3d1   : > { %v1437_v47 = vmul.f32 0.01, %v1411_v46 }
 0x3d3   : > { %v1453_v13 = vmax.f32 %v1411_v46, %v1437_v47 }
 0x3d5   : > { %v1480_v52 = vpack.c.bf16 %v1453_v13, %v1452_v48 }
 0x3d6   : > { %v1413_v53 = vpop.f32.mrf.mxu3 }
 0x3d7   : > { %1599 = vmatmul.bf16.gmra.mxu0 %v1480_v52  ;;  %1648 = vmatmul.bf16.gmra.mxu1 %v1480_v52  ;;  %v1414_v54 = vadd.f32 %v1413_v53, %v2876_v59 }
 0x3d9   : > { %v1438_v60 = vmul.f32 0.01, %v1414_v54 }
 0x3db   : > { %v1454_v0 = vmax.f32 %v1414_v54, %v1438_v60 }
 0x3de   : > { %v1415_v58 = vpop.f32.mrf.mxu3 }
 0x3df   : > { %v1416_v62 = vadd.f32 %v1415_v58, %v2876_v59 }
 0x3e1   : > { %v1439_v63 = vmul.f32 0.01, %v1416_v62 }
 0x3e3   : > { %v1455_v1 = vmax.f32 %v1416_v62, %v1439_v63 }
 0x3e5   : > { %v1481_v5 = vpack.c.bf16 %v1455_v1, %v1454_v0 }
 0x3e6   : > { %v1418_v6 = vpop.f32.mrf.mxu3 }
 0x3e7   : > { %1604 = vmatmul.bf16.gmra.mxu0 %v1481_v5  ;;  %1653 = vmatmul.bf16.gmra.mxu1 %v1481_v5  ;;  %v1419_v10 = vadd.f32 %v1418_v6, %v2876_v59 }
 0x3e9   : > { %v1440_v12 = vmul.f32 0.01, %v1419_v10 }
 0x3eb   : > { %v1456_v16 = vmax.f32 %v1419_v10, %v1440_v12 }
 0x3ee   : > { %v1420_v11 = vpop.f32.mrf.mxu3 }
 0x3ef   : > { %v1421_v14 = vadd.f32 %v1420_v11, %v2876_v59 }
 0x3f1   : > { %v1441_v15 = vmul.f32 0.01, %v1421_v14 }
 0x3f3   : > { %v1457_v17 = vmax.f32 %v1421_v14, %v1441_v15 }
 0x3f5   : > { %v1482_v18 = vpack.c.bf16 %v1457_v17, %v1456_v16 }
 0x3f6   : > { %v1423_v19 = vpop.f32.mrf.mxu3 }
 0x3f7   : > { %1609 = vmatmul.bf16.gmra.mxu0 %v1482_v18  ;;  %1658 = vmatmul.bf16.gmra.mxu1 %v1482_v18  ;;  %v1424_v24 = vadd.f32 %v1423_v19, %v2876_v59 }
 0x3f9   : > { %v1442_v27 = vmul.f32 0.01, %v1424_v24 }
 0x3fb   : > { %v1458_v30 = vmax.f32 %v1424_v24, %v1442_v27 }
 0x3fe   : > { %v1425_v26 = vpop.f32.mrf.mxu3 }
 0x3ff   : > { %v1426_v28 = vadd.f32 %v1425_v26, %v2876_v59 }
 0x401   : > { %v1443_v29 = vmul.f32 0.01, %v1426_v28 }
 0x403   : > { %v1459_v31 = vmax.f32 %v1426_v28, %v1443_v29 }
 0x405   : > { %v1483_v32 = vpack.c.bf16 %v1459_v31, %v1458_v30 }
 0x407   : > { %1614 = vmatmul.bf16.gmra.mxu0 %v1483_v32  ;;  %1663 = vmatmul.bf16.gmra.mxu1 %v1483_v32 }
 0x414   : > { %v1580_v34 = vpop.f32.mrf.mxu0  ;;  %v1629_v35 = vpop.f32.mrf.mxu1 }
 0x415   : > { %v1581_v38 = vadd.f32 %v1580_v34, %v2897_v36  ;;  %v1630_v59 = vadd.f32 %v1629_v35, %v2899_v37 }
 0x417   : > { %v1669_v40 = vmul.f32 0.01, %v1581_v38  ;;  %v1670_v41 = vmul.f32 0.01, %v1630_v59 }
 0x419   : > { %v1701_v47 = vmax.f32 %v1581_v38, %v1669_v40  ;;  %v1702_v48 = vmax.f32 %v1630_v59, %v1670_v41 }
 0x41c   : > { %v1582_v39 = vpop.f32.mrf.mxu0  ;;  %v1631_v61 = vpop.f32.mrf.mxu1 }
 0x41d   : > { %v1583_v42 = vadd.f32 %v1582_v39, %v2897_v36  ;;  %v1632_v43 = vadd.f32 %v1631_v61, %v2899_v37 }
 0x41f   : > { %v1671_v44 = vmul.f32 0.01, %v1583_v42  ;;  %v1672_v46 = vmul.f32 0.01, %v1632_v43 }
 0x421   : > { %v1703_v13 = vmax.f32 %v1583_v42, %v1671_v44  ;;  %v1704_v49 = vmax.f32 %v1632_v43, %v1672_v46 }
 0x423   : > { %v1765_v50 = vpack.c.bf16 %v1703_v13, %v1701_v47  ;;  %v1766_v51 = vpack.c.bf16 %v1704_v49, %v1702_v48 }
 0x424   : > { %v1585_v52 = vpop.f32.mrf.mxu0  ;;  %v1634_v53 = vpop.f32.mrf.mxu1 }
 0x425   : > { %1886 = vmatmul.bf16.vlgmr.msra.gmra.mxu2 %v1765_v50  ;;  %1935 = vmatmul.bf16.vlgmr.msra.gmra.mxu3 %v1766_v51  ;;  %v1586_v54 = vadd.f32 %v1585_v52, %v2897_v36  ;;  %v1635_v55 = vadd.f32 %v1634_v53, %v2899_v37 }
 0x427   : > { %v1673_v58 = vmul.f32 0.01, %v1586_v54  ;;  %v1674_v60 = vmul.f32 0.01, %v1635_v55 }
 0x429   : > { %v1705_v2 = vmax.f32 %v1586_v54, %v1673_v58  ;;  %v1706_v3 = vmax.f32 %v1635_v55, %v1674_v60 }
 0x42c   : > { %v1587_v56 = vpop.f32.mrf.mxu0  ;;  %v1636_v57 = vpop.f32.mrf.mxu1 }
 0x42d   : > { %v1588_v62 = vadd.f32 %v1587_v56, %v2897_v36  ;;  %v1637_v63 = vadd.f32 %v1636_v57, %v2899_v37 }
 0x42f   : > { %v1675_v0 = vmul.f32 0.01, %v1588_v62  ;;  %v1676_v1 = vmul.f32 0.01, %v1637_v63 }
 0x431   : > { %v1707_v4 = vmax.f32 %v1588_v62, %v1675_v0  ;;  %v1708_v5 = vmax.f32 %v1637_v63, %v1676_v1 }
 0x433   : > { %v1767_v6 = vpack.c.bf16 %v1707_v4, %v1705_v2  ;;  %v1768_v7 = vpack.c.bf16 %v1708_v5, %v1706_v3 }
 0x434   : > { %v1590_v8 = vpop.f32.mrf.mxu0  ;;  %v1639_v9 = vpop.f32.mrf.mxu1 }
 0x435   : > { %1891 = vmatmul.bf16.gmra.mxu2 %v1767_v6  ;;  %1940 = vmatmul.bf16.gmra.mxu3 %v1768_v7  ;;  %v1591_v10 = vadd.f32 %v1590_v8, %v2897_v36  ;;  %v1640_v11 = vadd.f32 %v1639_v9, %v2899_v37 }
 0x437   : > { %v1677_v15 = vmul.f32 0.01, %v1591_v10  ;;  %v1678_v16 = vmul.f32 0.01, %v1640_v11 }
 0x439   : > { %v1709_v20 = vmax.f32 %v1591_v10, %v1677_v15  ;;  %v1710_v21 = vmax.f32 %v1640_v11, %v1678_v16 }
 0x43c   : > { %v1592_v12 = vpop.f32.mrf.mxu0  ;;  %v1641_v14 = vpop.f32.mrf.mxu1 }
 0x43d   : > { %v1593_v17 = vadd.f32 %v1592_v12, %v2897_v36  ;;  %v1642_v18 = vadd.f32 %v1641_v14, %v2899_v37 }
 0x43f   : > { %v1679_v19 = vmul.f32 0.01, %v1593_v17  ;;  %v1680_v45 = vmul.f32 0.01, %v1642_v18 }
 0x441   : > { %v1711_v22 = vmax.f32 %v1593_v17, %v1679_v19  ;;  %v1712_v23 = vmax.f32 %v1642_v18, %v1680_v45 }
 0x443   : > { %v1769_v24 = vpack.c.bf16 %v1711_v22, %v1709_v20  ;;  %v1770_v25 = vpack.c.bf16 %v1712_v23, %v1710_v21 }
 0x444   : > { %v1595_v26 = vpop.f32.mrf.mxu0  ;;  %v1644_v27 = vpop.f32.mrf.mxu1 }
 0x445   : > { %1896 = vmatmul.bf16.gmra.mxu2 %v1769_v24  ;;  %1945 = vmatmul.bf16.gmra.mxu3 %v1770_v25  ;;  %v1596_v28 = vadd.f32 %v1595_v26, %v2897_v36  ;;  %v1645_v29 = vadd.f32 %v1644_v27, %v2899_v37 }
 0x447   : > { %v1681_v32 = vmul.f32 0.01, %v1596_v28  ;;  %v1682_v33 = vmul.f32 0.01, %v1645_v29 }
 0x449   : > { %v1713_v39 = vmax.f32 %v1596_v28, %v1681_v32  ;;  %v1714_v61 = vmax.f32 %v1645_v29, %v1682_v33 }
 0x44c   : > { %v1597_v30 = vpop.f32.mrf.mxu0  ;;  %v1646_v31 = vpop.f32.mrf.mxu1 }
 0x44d   : > { %v1598_v34 = vadd.f32 %v1597_v30, %v2897_v36  ;;  %v1647_v35 = vadd.f32 %v1646_v31, %v2899_v37 }
 0x44f   : > { %v1683_v38 = vmul.f32 0.01, %v1598_v34  ;;  %v1684_v59 = vmul.f32 0.01, %v1647_v35 }
 0x451   : > { %v1715_v40 = vmax.f32 %v1598_v34, %v1683_v38  ;;  %v1716_v41 = vmax.f32 %v1647_v35, %v1684_v59 }
 0x453   : > { %v1771_v42 = vpack.c.bf16 %v1715_v40, %v1713_v39  ;;  %v1772_v43 = vpack.c.bf16 %v1716_v41, %v1714_v61 }
 0x454   : > { %v1600_v44 = vpop.f32.mrf.mxu0  ;;  %v1649_v46 = vpop.f32.mrf.mxu1 }
 0x455   : > { %1901 = vmatmul.bf16.gmra.mxu2 %v1771_v42  ;;  %1950 = vmatmul.bf16.gmra.mxu3 %v1772_v43  ;;  %v1601_v47 = vadd.f32 %v1600_v44, %v2897_v36  ;;  %v1650_v48 = vadd.f32 %v1649_v46, %v2899_v37 }
 0x457   : > { %v1685_v50 = vmul.f32 0.01, %v1601_v47  ;;  %v1686_v51 = vmul.f32 0.01, %v1650_v48 }
 0x459   : > { %v1717_v56 = vmax.f32 %v1601_v47, %v1685_v50  ;;  %v1718_v57 = vmax.f32 %v1650_v48, %v1686_v51 }
 0x45c   : > { %v1602_v13 = vpop.f32.mrf.mxu0  ;;  %v1651_v49 = vpop.f32.mrf.mxu1 }
 0x45d   : > { %v1603_v52 = vadd.f32 %v1602_v13, %v2897_v36  ;;  %v1652_v53 = vadd.f32 %v1651_v49, %v2899_v37 }
 0x45f   : > { %v1687_v54 = vmul.f32 0.01, %v1603_v52  ;;  %v1688_v55 = vmul.f32 0.01, %v1652_v53 }
 0x461   : > { %v1719_v58 = vmax.f32 %v1603_v52, %v1687_v54  ;;  %v1720_v60 = vmax.f32 %v1652_v53, %v1688_v55  ;;  %v2936_v54 = vld [vmem:[%s2997_s2 + $0x7] ss:$0 sm:$0xff] }
 0x463   : > { %v1773_v62 = vpack.c.bf16 %v1719_v58, %v1717_v56  ;;  %v1774_v63 = vpack.c.bf16 %v1720_v60, %v1718_v57 }
 0x464   : > { %v1605_v0 = vpop.f32.mrf.mxu0  ;;  %v1654_v1 = vpop.f32.mrf.mxu1 }
 0x465   : > { %1906 = vmatmul.bf16.gmra.mxu2 %v1773_v62  ;;  %1955 = vmatmul.bf16.gmra.mxu3 %v1774_v63  ;;  %v1606_v2 = vadd.f32 %v1605_v0, %v2897_v36  ;;  %v1655_v3 = vadd.f32 %v1654_v1, %v2899_v37 }
 0x467   : > { %v1689_v6 = vmul.f32 0.01, %v1606_v2  ;;  %v1690_v7 = vmul.f32 0.01, %v1655_v3 }
 0x469   : > { %v1721_v12 = vmax.f32 %v1606_v2, %v1689_v6  ;;  %v1722_v14 = vmax.f32 %v1655_v3, %v1690_v7 }
 0x46c   : > { %v1607_v4 = vpop.f32.mrf.mxu0  ;;  %v1656_v5 = vpop.f32.mrf.mxu1 }
 0x46d   : > { %v1608_v8 = vadd.f32 %v1607_v4, %v2897_v36  ;;  %v1657_v9 = vadd.f32 %v1656_v5, %v2899_v37 }
 0x46f   : > { %v1691_v10 = vmul.f32 0.01, %v1608_v8  ;;  %v1692_v11 = vmul.f32 0.01, %v1657_v9 }
 0x471   : > { %v1723_v15 = vmax.f32 %v1608_v8, %v1691_v10  ;;  %v1724_v16 = vmax.f32 %v1657_v9, %v1692_v11 }
 0x473   : > { %v1775_v17 = vpack.c.bf16 %v1723_v15, %v1721_v12  ;;  %v1776_v18 = vpack.c.bf16 %v1724_v16, %v1722_v14 }
 0x474   : > { %v1610_v19 = vpop.f32.mrf.mxu0  ;;  %v1659_v45 = vpop.f32.mrf.mxu1 }
 0x475   : > { %1911 = vmatmul.bf16.gmra.mxu2 %v1775_v17  ;;  %1960 = vmatmul.bf16.gmra.mxu3 %v1776_v18  ;;  %v1611_v20 = vadd.f32 %v1610_v19, %v2897_v36  ;;  %v1660_v21 = vadd.f32 %v1659_v45, %v2899_v37 }
 0x477   : > { %v1693_v24 = vmul.f32 0.01, %v1611_v20  ;;  %v1694_v25 = vmul.f32 0.01, %v1660_v21 }
 0x479   : > { %v1725_v30 = vmax.f32 %v1611_v20, %v1693_v24  ;;  %v1726_v31 = vmax.f32 %v1660_v21, %v1694_v25 }
 0x47c   : > { %v1612_v22 = vpop.f32.mrf.mxu0  ;;  %v1661_v23 = vpop.f32.mrf.mxu1 }
 0x47d   : > { %v1613_v26 = vadd.f32 %v1612_v22, %v2897_v36  ;;  %v1662_v27 = vadd.f32 %v1661_v23, %v2899_v37 }
 0x47f   : > { %v1695_v28 = vmul.f32 0.01, %v1613_v26  ;;  %v1696_v29 = vmul.f32 0.01, %v1662_v27 }
 0x481   : > { %v1727_v32 = vmax.f32 %v1613_v26, %v1695_v28  ;;  %v1728_v33 = vmax.f32 %v1662_v27, %v1696_v29 }
 0x483   : > { %v1777_v34 = vpack.c.bf16 %v1727_v32, %v1725_v30  ;;  %v1778_v35 = vpack.c.bf16 %v1728_v33, %v1726_v31 }
 0x484   : > { %v1615_v38 = vpop.f32.mrf.mxu0  ;;  %v1664_v59 = vpop.f32.mrf.mxu1 }
 0x485   : > { %1916 = vmatmul.bf16.gmra.mxu2 %v1777_v34  ;;  %1965 = vmatmul.bf16.gmra.mxu3 %v1778_v35  ;;  %v1616_v39 = vadd.f32 %v1615_v38, %v2897_v36  ;;  %v1665_v61 = vadd.f32 %v1664_v59, %v2899_v37 }
 0x487   : > { %v1697_v42 = vmul.f32 0.01, %v1616_v39  ;;  %v1698_v43 = vmul.f32 0.01, %v1665_v61 }
 0x489   : > { %v1729_v13 = vmax.f32 %v1616_v39, %v1697_v42  ;;  %v1730_v49 = vmax.f32 %v1665_v61, %v1698_v43 }
 0x48c   : > { %v1617_v40 = vpop.f32.mrf.mxu0  ;;  %v1666_v41 = vpop.f32.mrf.mxu1 }
 0x48d   : > { %v1618_v44 = vadd.f32 %v1617_v40, %v2897_v36  ;;  %v1667_v46 = vadd.f32 %v1666_v41, %v2899_v37 }
 0x48f   : > { %v1699_v47 = vmul.f32 0.01, %v1618_v44  ;;  %v1700_v48 = vmul.f32 0.01, %v1667_v46 }
 0x491   : > { %v1731_v50 = vmax.f32 %v1618_v44, %v1699_v47  ;;  %v1732_v51 = vmax.f32 %v1667_v46, %v1700_v48 }
 0x493   : > { %v1779_v52 = vpack.c.bf16 %v1731_v50, %v1729_v13  ;;  %v1780_v53 = vpack.c.bf16 %v1732_v51, %v1730_v49 }
 0x495   : > { %1921 = vmatmul.bf16.gmra.mxu2 %v1779_v52  ;;  %1970 = vmatmul.bf16.gmra.mxu3 %v1780_v53 }
 0x4a8   : > { %v1887_v55 = vpop.f32.mrf.mxu2  ;;  %v1936_v36 = vpop.f32.mrf.mxu3 }
 0x4a9   : > { %v1888_v37 = vadd.f32 %v1887_v55, %v2936_v54 }
 0x4ab   : > { %v1937_v56 = vadd.f32 %v1936_v36, %v1888_v37 }
 0x4ad   : > { %1977 = vst.msk [vmem:[%s2943_s19] sm:$0xff] %vm1976_vm1, %v1937_v56 }
 0x4b0   : > { %v1889_v57 = vpop.f32.mrf.mxu2  ;;  %v1938_v58 = vpop.f32.mrf.mxu3 }
 0x4b1   : > { %v1890_v60 = vadd.f32 %v1889_v57, %v2936_v54 }
 0x4b3   : > { %v1939_v62 = vadd.f32 %v1938_v58, %v1890_v60 }
 0x4b5   : > { %1978 = vst.msk [vmem:[%s2943_s19 + $0x8] sm:$0xff] %vm1976_vm1, %v1939_v62 }
 0x4b8   : > { %v1892_v63 = vpop.f32.mrf.mxu2  ;;  %v1941_v0 = vpop.f32.mrf.mxu3 }
 0x4b9   : > { %v1893_v1 = vadd.f32 %v1892_v63, %v2936_v54 }
 0x4bb   : > { %v1942_v2 = vadd.f32 %v1941_v0, %v1893_v1 }
 0x4bd   : > { %1979 = vst.msk [vmem:[%s2943_s19 + $0x10] sm:$0xff] %vm1976_vm1, %v1942_v2 }
 0x4c0   : > { %v1894_v3 = vpop.f32.mrf.mxu2  ;;  %v1943_v4 = vpop.f32.mrf.mxu3 }
 0x4c1   : > { %v1895_v5 = vadd.f32 %v1894_v3, %v2936_v54 }
 0x4c3   : > { %v1944_v6 = vadd.f32 %v1943_v4, %v1895_v5 }
 0x4c5   : > { %1980 = vst.msk [vmem:[%s2943_s19 + $0x18] sm:$0xff] %vm1976_vm1, %v1944_v6 }
 0x4c8   : > { %v1897_v7 = vpop.f32.mrf.mxu2  ;;  %v1946_v8 = vpop.f32.mrf.mxu3 }
 0x4c9   : > { %v1898_v9 = vadd.f32 %v1897_v7, %v2936_v54 }
 0x4cb   : > { %v1947_v10 = vadd.f32 %v1946_v8, %v1898_v9 }
 0x4cd   : > { %1981 = vst.msk [vmem:[%s2943_s19 + $0x20] sm:$0xff] %vm1976_vm1, %v1947_v10 }
 0x4d0   : > { %v1899_v11 = vpop.f32.mrf.mxu2  ;;  %v1948_v12 = vpop.f32.mrf.mxu3 }
 0x4d1   : > { %v1900_v14 = vadd.f32 %v1899_v11, %v2936_v54 }
 0x4d3   : > { %v1949_v15 = vadd.f32 %v1948_v12, %v1900_v14 }
 0x4d5   : > { %1982 = vst.msk [vmem:[%s2943_s19 + $0x28] sm:$0xff] %vm1976_vm1, %v1949_v15 }
 0x4d8   : > { %v1902_v16 = vpop.f32.mrf.mxu2  ;;  %v1951_v17 = vpop.f32.mrf.mxu3 }
 0x4d9   : > { %v1903_v18 = vadd.f32 %v1902_v16, %v2936_v54 }
 0x4db   : > { %v1952_v19 = vadd.f32 %v1951_v17, %v1903_v18 }
 0x4dd   : > { %1983 = vst.msk [vmem:[%s2943_s19 + $0x30] sm:$0xff] %vm1976_vm1, %v1952_v19 }
 0x4e0   : > { %v1904_v45 = vpop.f32.mrf.mxu2  ;;  %v1953_v20 = vpop.f32.mrf.mxu3 }
 0x4e1   : > { %v1905_v21 = vadd.f32 %v1904_v45, %v2936_v54 }
 0x4e3   : > { %v1954_v22 = vadd.f32 %v1953_v20, %v1905_v21 }
 0x4e5   : > { %1984 = vst.msk [vmem:[%s2943_s19 + $0x38] sm:$0xff] %vm1976_vm1, %v1954_v22 }
 0x4e8   : > { %v1907_v23 = vpop.f32.mrf.mxu2  ;;  %v1956_v24 = vpop.f32.mrf.mxu3 }
 0x4e9   : > { %v1908_v25 = vadd.f32 %v1907_v23, %v2936_v54 }
 0x4eb   : > { %v1957_v26 = vadd.f32 %v1956_v24, %v1908_v25 }
 0x4ed   : > { %1985 = vst.msk [vmem:[%s2943_s19 + $0x40] sm:$0xff] %vm1976_vm1, %v1957_v26 }
 0x4f0   : > { %v1909_v27 = vpop.f32.mrf.mxu2  ;;  %v1958_v28 = vpop.f32.mrf.mxu3 }
 0x4f1   : > { %v1910_v29 = vadd.f32 %v1909_v27, %v2936_v54 }
 0x4f3   : > { %v1959_v30 = vadd.f32 %v1958_v28, %v1910_v29 }
 0x4f5   : > { %1986 = vst.msk [vmem:[%s2943_s19 + $0x48] sm:$0xff] %vm1976_vm1, %v1959_v30 }
 0x4f8   : > { %v1912_v31 = vpop.f32.mrf.mxu2  ;;  %v1961_v32 = vpop.f32.mrf.mxu3 }
 0x4f9   : > { %v1913_v33 = vadd.f32 %v1912_v31, %v2936_v54 }
 0x4fb   : > { %v1962_v34 = vadd.f32 %v1961_v32, %v1913_v33 }
 0x4fd   : > { %1987 = vst.msk [vmem:[%s2943_s19 + $0x50] sm:$0xff] %vm1976_vm1, %v1962_v34 }
 0x500   : > { %v1914_v35 = vpop.f32.mrf.mxu2  ;;  %v1963_v38 = vpop.f32.mrf.mxu3 }
 0x501   : > { %v1915_v59 = vadd.f32 %v1914_v35, %v2936_v54 }
 0x503   : > { %v1964_v39 = vadd.f32 %v1963_v38, %v1915_v59 }
 0x505   : > { %1988 = vst.msk [vmem:[%s2943_s19 + $0x58] sm:$0xff] %vm1976_vm1, %v1964_v39 }
 0x508   : > { %v1917_v61 = vpop.f32.mrf.mxu2  ;;  %v1966_v40 = vpop.f32.mrf.mxu3 }
 0x509   : > { %v1918_v41 = vadd.f32 %v1917_v61, %v2936_v54 }
 0x50b   : > { %v1967_v42 = vadd.f32 %v1966_v40, %v1918_v41 }
 0x50d   : > { %1989 = vst.msk [vmem:[%s2943_s19 + $0x60] sm:$0xff] %vm1976_vm1, %v1967_v42 }
 0x510   : > { %v1919_v43 = vpop.f32.mrf.mxu2  ;;  %v1968_v44 = vpop.f32.mrf.mxu3 }
 0x511   : > { %v1920_v46 = vadd.f32 %v1919_v43, %v2936_v54 }
 0x513   : > { %v1969_v47 = vadd.f32 %v1968_v44, %v1920_v46 }
 0x515   : > { %1990 = vst.msk [vmem:[%s2943_s19 + $0x68] sm:$0xff] %vm1976_vm1, %v1969_v47 }
 0x518   : > { %v1922_v48 = vpop.f32.mrf.mxu2  ;;  %v1971_v13 = vpop.f32.mrf.mxu3 }
 0x519   : > { %v1923_v49 = vadd.f32 %v1922_v48, %v2936_v54 }
 0x51b   : > { %v1972_v50 = vadd.f32 %v1971_v13, %v1923_v49 }
 0x51d   : > { %1991 = vst.msk [vmem:[%s2943_s19 + $0x70] sm:$0xff] %vm1976_vm1, %v1972_v50 }
 0x520   : > { %v1924_v51 = vpop.f32.mrf.mxu2  ;;  %v1973_v53 = vpop.f32.mrf.mxu3 }
 0x521   : > { %v1925_v52 = vadd.f32 %v1924_v51, %v2936_v54 }
 0x523   : > { %v1974_v55 = vadd.f32 %v1973_v53, %v1925_v52 }
 0x525   : > { %1992 = vst.msk [vmem:[%s2943_s19 + $0x78] sm:$0xff] %vm1976_vm1, %v1974_v55 }
 0x526 PF: > { %s14_s12 = sadd.s32 1, %s2657_s12  }
 0x527   : > { %p11_p7 = scmp.ge.s32.totalorder %s14_s12, 4  }
 0x529   :  { %13 = sbr.rel (!%p11_p7) target bundleno = 1 (0x1), region = 68 }
 0x52e   :  { %2015 = vsyncpa [#allocation4], 1 }
 0x52f   :  { %2017 = vsyncpa [#allocation4 + $0x1], 1 }

</bundles_post_ra>
